<compile_context>
chip_gen: v5e
topology: v5e:2x2
jax: 0.10.0
libtpu: 0.0.40
codegen_flags: <defaults>
</compile_context>

<pallas_src>
import jax
import jax.numpy as jnp
import numpy as np
from jax.experimental import pallas as pl
from jax.experimental.pallas import tpu as pltpu

# ----------------------------- config (small, synthetic) -----------------------------
B = 2                # batch
USERS, ITEMS = 20, 30
U_LF, I_LF = 8, 8    # user / item latent factors
EUI = U_LF + I_LF    # concatenated [user | item] embedding width
V = 32               # vocabulary size
C = 16               # context size (== GRU hidden size)
H = 32               # encoder hidden size
T = 10               # max_tip_len (MAX_LENGTH + 2)
SEQ_START_ID = 2
# n_regression_layers = 2, n_review_layers = 2 (structure hardcoded below)

# ----------------------------- packed-slab layout -----------------------------
# Weight slab: every matrix pre-transposed so the kernel does plain x @ W, packed
# along rows at 8-aligned offsets, all column ranges starting at lane 0.
WS_COLS = 64
RW_MERGE = 0      # [m_wu^T ; m_wi^T]   (EUI, H)
RW_CTXUI = 16     # [c_wu^T ; c_wi^T]   (EUI, C)
RW_WHH = 32       # g_whh^T             (C, 3C)  cols ordered [r | z | n]
RW_WOUT = 48      # d_wout^T            (C, V)
RW_RV1 = 64       # [r_w1^T | v_w1^T]   (H, 2H)  regression+review first layers fused
RW_RW2 = 96       # r_w2^T              (H, H)
RW_VW2 = 128      # v_w2^T              (H, V)
RW_RW3 = 160      # r_w3^T              (H, 1)
RW_WCR = 192      # c_wr^T              (V, C)
WS_ROWS = 224

# Bias slab: one (1, w) row per bias / constant.
BR_MBI, BR_RVB1, BR_RB2, BR_RB3, BR_VB2, BR_CBC, BR_RW, BR_GI, BR_BHN, BR_BOUT = range(10)
BS_ROWS = 16


# ----------------------------- fused encoder + decoder kernel -----------------------------
def fused_kernel(eui_ref, w_ref, b_ref, enc_ref, tip_ref, h_sc):
    f32 = jnp.float32
    mm = lambda a, b: jnp.dot(a, b, preferred_element_type=f32)

    eui = eui_ref[...]                                      # (B, EUI)

    # ---- bias / constant rows (single-row reads of the bias slab) ----
    b_mi = b_ref[BR_MBI:BR_MBI + 1, 0:H]                    # Merger bias           (1, H)
    b_rv1 = b_ref[BR_RVB1:BR_RVB1 + 1, 0:2 * H]             # [r_b1 | v_b1]         (1, 2H)
    b_r2 = b_ref[BR_RB2:BR_RB2 + 1, 0:H]
    b_r3 = b_ref[BR_RB3:BR_RB3 + 1, 0:1]
    b_v2 = b_ref[BR_VB2:BR_VB2 + 1, 0:V]
    b_cbc = b_ref[BR_CBC:BR_CBC + 1, 0:C]
    rw = b_ref[BR_RW:BR_RW + 1, 0:1]                        # rating weight         (1, 1)
    gi = b_ref[BR_GI:BR_GI + 1, 0:3 * C]                    # x0@Wih^T + b_ih (+ b_hr,b_hz folded)
    b_hn = b_ref[BR_BHN:BR_BHN + 1, 0:C]                    # b_hn (NOT folded)
    b_out = b_ref[BR_BOUT:BR_BOUT + 1, 0:V]

    # -------- encoder --------
    # Merger: sigmoid([eu|ei] @ [Wu^T;Wi^T] + b_i)
    merged = jax.nn.sigmoid(mm(eui, w_ref[RW_MERGE:RW_MERGE + EUI, 0:H]) + b_mi)

    # First layers of regression + review MLPs fused into one (H, 2H) matmul.
    rv1 = jax.nn.sigmoid(mm(merged, w_ref[RW_RV1:RW_RV1 + H, 0:2 * H]) + b_rv1)
    r1 = rv1[:, 0:H]
    v1 = rv1[:, H:2 * H]

    # Regression tail: Linear(H,H) then Linear(H,1)
    r2 = mm(r1, w_ref[RW_RW2:RW_RW2 + H, 0:H]) + b_r2
    reg = mm(r2, w_ref[RW_RW3:RW_RW3 + H, 0:1]) + b_r3      # (B, 1)

    # Review tail: Linear(H,V) + log_softmax over vocab
    review = mm(v1, w_ref[RW_VW2:RW_VW2 + H, 0:V]) + b_v2   # (B, V)
    m = jnp.max(review, axis=-1, keepdims=True)
    lse = jnp.log(jnp.sum(jnp.exp(review - m), axis=-1, keepdims=True)) + m
    rls = review - lse

    # ContextMerger: tanh(eu@Wcu^T + ei@Wci^T + rating_weight*reg + review@Wcr^T + bcr)
    ctx = jnp.tanh(mm(eui, w_ref[RW_CTXUI:RW_CTXUI + EUI, 0:C])
                   + rw * reg
                   + mm(review, w_ref[RW_WCR:RW_WCR + V, 0:C])
                   + b_cbc)                                  # (B, C)

    # Packed encoder output: rows [0:B] = review log-softmax, rows [B:2B] = reg
    # (reg broadcast across lanes; wrapper reads lane 0).
    enc_ref[0:B, :] = rls
    enc_ref[B:2 * B, :] = jnp.broadcast_to(reg, (B, V))

    # -------- decoder (GRU, PyTorch gate order [r, z, n]), T fully unrolled --------
    whhT = w_ref[RW_WHH:RW_WHH + C, 0:3 * C]                 # (C, 3C), loaded once
    gi_r = gi[:, 0:C]
    gi_z = gi[:, C:2 * C]
    gi_n = gi[:, 2 * C:3 * C]

    h = ctx
    for t in range(T):
        gh = mm(h, whhT)                                     # ONE (B,C)@(C,3C) per step
        r = jax.nn.sigmoid(gi_r + gh[:, 0:C])                # b_ir+b_hr already in gi_r
        z = jax.nn.sigmoid(gi_z + gh[:, C:2 * C])            # b_iz+b_hz already in gi_z
        n = jnp.tanh(gi_n + r * (gh[:, 2 * C:3 * C] + b_hn)) # b_hn must stay inside r*(...)
        h = (1.0 - z) * n + z * h
        h_sc[t * B:(t + 1) * B, :] = h                       # one whole-(B,C) block store / step

    # Batched output projection + single log_softmax over all T*B (time-major) rows.
    h_all = h_sc[...]                                        # (T*B, C)
    logits = mm(h_all, w_ref[RW_WOUT:RW_WOUT + C, 0:V]) + b_out
    lm = jnp.max(logits, axis=-1, keepdims=True)
    llse = jnp.log(jnp.sum(jnp.exp(logits - lm), axis=-1, keepdims=True)) + lm
    tip_ref[...] = logits - llse                             # (T*B, V), time-major


# ----------------------------- wrapper -----------------------------
_VMEM = pl.BlockSpec(memory_space=pltpu.MemorySpace.VMEM)


def fused_forward(eui, wslab, bslab):
    enc, tip_tm = pl.pallas_call(
        fused_kernel,
        out_shape=(
            jax.ShapeDtypeStruct((2 * B, V), jnp.float32),    # [rls ; reg-broadcast]
            jax.ShapeDtypeStruct((T * B, V), jnp.float32),    # tip, time-major rows
        ),
        in_specs=[_VMEM, _VMEM, _VMEM],
        out_specs=(_VMEM, _VMEM),
        scratch_shapes=[pltpu.VMEM((T * B, C), jnp.float32)],
    )(eui, wslab, bslab)

    rls = enc[0:B, :]                                         # (B, V)
    reg = enc[B:2 * B, 0:1]                                   # (B, 1)
    tip = jnp.transpose(tip_tm.reshape(T, B, V), (1, 0, 2))   # (B, T, V)
    return reg, rls, tip


def model_forward(input_user, input_item, packed):
    # Embedding gathers are per-call glue (data-dependent); everything else is packed.
    eu = jnp.take(packed["user_emb"], input_user, axis=0)     # (B, U_LF)
    ei = jnp.take(packed["item_emb"], input_item, axis=0)     # (B, I_LF)
    eui = jnp.concatenate([eu, ei], axis=1).astype(jnp.float32)
    return fused_forward(eui, packed["wslab"], packed["bslab"])


# ----------------------------- one-time parameter packing -----------------------------
def pack_params(p):
    f = lambda a: np.asarray(a, np.float32)

    W = np.zeros((WS_ROWS, WS_COLS), np.float32)
    W[RW_MERGE:RW_MERGE + EUI, 0:H] = np.concatenate([f(p["m_wu"]).T, f(p["m_wi"]).T], axis=0)
    W[RW_CTXUI:RW_CTXUI + EUI, 0:C] = np.concatenate([f(p["c_wu"]).T, f(p["c_wi"]).T], axis=0)
    W[RW_WHH:RW_WHH + C, 0:3 * C] = f(p["g_whh"]).T
    W[RW_WOUT:RW_WOUT + C, 0:V] = f(p["d_wout"]).T
    W[RW_RV1:RW_RV1 + H, 0:2 * H] = np.concatenate([f(p["r_w1"]).T, f(p["v_w1"]).T], axis=1)
    W[RW_RW2:RW_RW2 + H, 0:H] = f(p["r_w2"]).T
    W[RW_VW2:RW_VW2 + H, 0:V] = f(p["v_w2"]).T
    W[RW_RW3:RW_RW3 + H, 0:1] = f(p["r_w3"]).T
    W[RW_WCR:RW_WCR + V, 0:C] = f(p["c_wr"]).T

    Bm = np.zeros((BS_ROWS, WS_COLS), np.float32)
    Bm[BR_MBI, 0:H] = f(p["m_bi"])
    Bm[BR_RVB1, 0:2 * H] = np.concatenate([f(p["r_b1"]), f(p["v_b1"])])
    Bm[BR_RB2, 0:H] = f(p["r_b2"])
    Bm[BR_RB3, 0:1] = f(p["r_b3"])
    Bm[BR_VB2, 0:V] = f(p["v_b2"])
    Bm[BR_CBC, 0:C] = f(p["c_bc"])
    Bm[BR_RW, 0:1] = f(p["c_rw"])
    # Loop-invariant GRU input gates: the decoder is fed the same SEQ_START_ID
    # embedding at every timestep, so gi is a constant.  Fold b_hr/b_hz into the
    # r/z portions (legal); b_hn must stay separate (used inside r*(gh_n+b_hn)).
    x0 = f(p["d_emb"])[SEQ_START_ID]                          # (C,)
    gi = x0 @ f(p["g_wih"]).T + f(p["g_bih"])                 # (3C,)
    gi[0:2 * C] += f(p["g_bhh"])[0:2 * C]
    Bm[BR_GI, 0:3 * C] = gi
    Bm[BR_BHN, 0:C] = f(p["g_bhh"])[2 * C:]
    Bm[BR_BOUT, 0:V] = f(p["d_bout"])

    return {
        "user_emb": jnp.asarray(p["user_emb"], jnp.float32),
        "item_emb": jnp.asarray(p["item_emb"], jnp.float32),
        "wslab": jnp.asarray(W),
        "bslab": jnp.asarray(Bm),
    }


# ----------------------------- pure-JAX reference -----------------------------
def reference_forward(input_user, input_item, p):
    eu = p["user_emb"][input_user]
    ei = p["item_emb"][input_item]
    merged = jax.nn.sigmoid(eu @ p["m_wu"].T + ei @ p["m_wi"].T + p["m_bi"])
    r1 = jax.nn.sigmoid(merged @ p["r_w1"].T + p["r_b1"])
    r2 = r1 @ p["r_w2"].T + p["r_b2"]
    reg = r2 @ p["r_w3"].T + p["r_b3"]
    v1 = jax.nn.sigmoid(merged @ p["v_w1"].T + p["v_b1"])
    review = v1 @ p["v_w2"].T + p["v_b2"]
    rls = jax.nn.log_softmax(review, axis=-1)
    ctx = jnp.tanh(eu @ p["c_wu"].T + ei @ p["c_wi"].T + p["c_rw"] * reg
                   + review @ p["c_wr"].T + p["c_bc"])
    x = jnp.broadcast_to(p["d_emb"][SEQ_START_ID], (B, C))
    h = ctx
    outs = []
    for _ in range(T):
        gi = x @ p["g_wih"].T + p["g_bih"]
        gh = h @ p["g_whh"].T + p["g_bhh"]
        r = jax.nn.sigmoid(gi[:, :C] + gh[:, :C])
        z = jax.nn.sigmoid(gi[:, C:2 * C] + gh[:, C:2 * C])
        n = jnp.tanh(gi[:, 2 * C:] + r * gh[:, 2 * C:])
        h = (1.0 - z) * n + z * h
        logits = h @ p["d_wout"].T + p["d_bout"]
        outs.append(jax.nn.log_softmax(logits, axis=-1))
    return reg, rls, jnp.stack(outs, axis=1)


# ----------------------------- parameter init -----------------------------
def init_params(key):
    def nxt():
        nonlocal key
        key, sub = jax.random.split(key)
        return sub

    def w(shape, scale=0.2):
        return jax.random.normal(nxt(), shape, jnp.float32) * scale

    return {
        # encoder embeddings
        "user_emb": w((USERS, U_LF), 0.5),
        "item_emb": w((ITEMS, I_LF), 0.5),
        # Merger
        "m_wu": w((H, U_LF)), "m_wi": w((H, I_LF)), "m_bi": w((H,)),
        # regression MLP (n_regression_layers = 2)
        "r_w1": w((H, H)), "r_b1": w((H,)),
        "r_w2": w((H, H)), "r_b2": w((H,)),
        "r_w3": w((1, H)), "r_b3": w((1,)),
        # review MLP (n_review_layers = 2)
        "v_w1": w((H, H)), "v_b1": w((H,)),
        "v_w2": w((V, H)), "v_b2": w((V,)),
        # ContextMerger
        "c_wu": w((C, U_LF)), "c_wi": w((C, I_LF)),
        "c_rw": w((1,)),
        "c_wr": w((C, V)), "c_bc": w((C,)),
        # decoder
        "d_emb": w((V, C), 0.5),
        "g_wih": w((3 * C, C)), "g_whh": w((3 * C, C)),
        "g_bih": w((3 * C,)), "g_bhh": w((3 * C,)),
        "d_wout": w((V, C)), "d_bout": w((V,)),
    }


# ----------------------------- main -----------------------------
if __name__ == "__main__":
    params = init_params(jax.random.PRNGKey(0))
    packed = pack_params(params)          # one-time packing, off the per-call path

    k_u, k_i = jax.random.split(jax.random.PRNGKey(1))
    input_user = jax.random.randint(k_u, (B,), 0, USERS, dtype=jnp.int32)
    input_item = jax.random.randint(k_i, (B,), 0, ITEMS, dtype=jnp.int32)

    fwd = jax.jit(model_forward)
    reg, review_ls, tip_out = fwd(input_user, input_item, packed)
    jax.block_until_ready((reg, review_ls, tip_out))

    reg_r, review_r, tip_r = reference_forward(input_user, input_item, params)
    assert reg.shape == (B, 1) and review_ls.shape == (B, V) and tip_out.shape == (B, T, V)
    np.testing.assert_allclose(np.asarray(reg), np.asarray(reg_r), rtol=1e-3, atol=1e-3)
    np.testing.assert_allclose(np.asarray(review_ls), np.asarray(review_r), rtol=1e-3, atol=1e-3)
    np.testing.assert_allclose(np.asarray(tip_out), np.asarray(tip_r), rtol=1e-3, atol=1e-3)

    print("KERNEL_OK")
</pallas_src>

<mosaic_0001>
module attributes {stable_mosaic.version = 11 : i64} {
  func.func @fused_kernel(%arg0: memref<2x16xf32, #tpu.memory_space<vmem>>, %arg1: memref<224x64xf32, #tpu.memory_space<vmem>>, %arg2: memref<16x64xf32, #tpu.memory_space<vmem>>, %arg3: memref<4x32xf32, #tpu.memory_space<vmem>>, %arg4: memref<20x32xf32, #tpu.memory_space<vmem>>, %arg5: memref<20x16xf32, #tpu.memory_space<vmem>>) attributes {dimension_semantics = [], scalar_prefetch = 0 : i64, scratch_operands = 1 : i64, tpu.core_type = #tpu.core_type<tc>} {
    %c0 = arith.constant 0 : index
    %c0_0 = arith.constant 0 : index
    %0 = vector.load %arg0[%c0, %c0_0] : memref<2x16xf32, #tpu.memory_space<vmem>>, vector<2x16xf32>
    %c0_1 = arith.constant 0 : index
    %c0_2 = arith.constant 0 : index
    %1 = vector.load %arg2[%c0_1, %c0_2] : memref<16x64xf32, #tpu.memory_space<vmem>>, vector<1x32xf32>
    %c1 = arith.constant 1 : index
    %c0_3 = arith.constant 0 : index
    %2 = vector.load %arg2[%c1, %c0_3] : memref<16x64xf32, #tpu.memory_space<vmem>>, vector<1x64xf32>
    %c2 = arith.constant 2 : index
    %c0_4 = arith.constant 0 : index
    %3 = vector.load %arg2[%c2, %c0_4] : memref<16x64xf32, #tpu.memory_space<vmem>>, vector<1x32xf32>
    %c3 = arith.constant 3 : index
    %c0_5 = arith.constant 0 : index
    %4 = vector.load %arg2[%c3, %c0_5] : memref<16x64xf32, #tpu.memory_space<vmem>>, vector<1x1xf32>
    %c4 = arith.constant 4 : index
    %c0_6 = arith.constant 0 : index
    %5 = vector.load %arg2[%c4, %c0_6] : memref<16x64xf32, #tpu.memory_space<vmem>>, vector<1x32xf32>
    %c5 = arith.constant 5 : index
    %c0_7 = arith.constant 0 : index
    %6 = vector.load %arg2[%c5, %c0_7] : memref<16x64xf32, #tpu.memory_space<vmem>>, vector<1x16xf32>
    %c6 = arith.constant 6 : index
    %c0_8 = arith.constant 0 : index
    %7 = vector.load %arg2[%c6, %c0_8] : memref<16x64xf32, #tpu.memory_space<vmem>>, vector<1x1xf32>
    %c7 = arith.constant 7 : index
    %c0_9 = arith.constant 0 : index
    %8 = vector.load %arg2[%c7, %c0_9] : memref<16x64xf32, #tpu.memory_space<vmem>>, vector<1x48xf32>
    %c8 = arith.constant 8 : index
    %c0_10 = arith.constant 0 : index
    %9 = vector.load %arg2[%c8, %c0_10] : memref<16x64xf32, #tpu.memory_space<vmem>>, vector<1x16xf32>
    %c9 = arith.constant 9 : index
    %c0_11 = arith.constant 0 : index
    %10 = vector.load %arg2[%c9, %c0_11] : memref<16x64xf32, #tpu.memory_space<vmem>>, vector<1x32xf32>
    %c0_12 = arith.constant 0 : index
    %c0_13 = arith.constant 0 : index
    %11 = vector.load %arg1[%c0_12, %c0_13] : memref<224x64xf32, #tpu.memory_space<vmem>>, vector<16x32xf32>
    %cst = arith.constant dense<0.000000e+00> : vector<2x32xf32>
    %12 = tpu.matmul %0, %11, %cst {dimension_numbers = #tpu.dot_dimension_numbers<[1], [0], [0], [1], [0, 0, 1, 1], [], []>} : vector<2x16xf32>, vector<16x32xf32>, vector<2x32xf32> -> vector<2x32xf32>
    %13 = vector.broadcast %1 : vector<1x32xf32> to vector<2x32xf32>
    %14 = arith.addf %12, %13 : vector<2x32xf32>
    %15 = arith.negf %14 : vector<2x32xf32>
    %16 = math.exp %15 : vector<2x32xf32>
    %cst_14 = arith.constant 1.000000e+00 : f32
    %17 = vector.broadcast %cst_14 : f32 to vector<2x32xf32>
    %18 = arith.addf %17, %16 : vector<2x32xf32>
    %19 = arith.divf %17, %18 : vector<2x32xf32>
    %c64 = arith.constant 64 : index
    %c0_15 = arith.constant 0 : index
    %20 = vector.load %arg1[%c64, %c0_15] : memref<224x64xf32, #tpu.memory_space<vmem>>, vector<32x64xf32>
    %cst_16 = arith.constant dense<0.000000e+00> : vector<2x64xf32>
    %21 = tpu.matmul %19, %20, %cst_16 {dimension_numbers = #tpu.dot_dimension_numbers<[1], [0], [0], [1], [0, 0, 1, 1], [], []>} : vector<2x32xf32>, vector<32x64xf32>, vector<2x64xf32> -> vector<2x64xf32>
    %22 = vector.broadcast %2 : vector<1x64xf32> to vector<2x64xf32>
    %23 = arith.addf %21, %22 : vector<2x64xf32>
    %24 = arith.negf %23 : vector<2x64xf32>
    %25 = math.exp %24 : vector<2x64xf32>
    %cst_17 = arith.constant 1.000000e+00 : f32
    %26 = vector.broadcast %cst_17 : f32 to vector<2x64xf32>
    %27 = arith.addf %26, %25 : vector<2x64xf32>
    %28 = arith.divf %26, %27 : vector<2x64xf32>
    %29 = vector.extract_strided_slice %28 {offsets = [0, 0], sizes = [2, 32], strides = [1, 1]} : vector<2x64xf32> to vector<2x32xf32>
    %30 = vector.extract_strided_slice %28 {offsets = [0, 32], sizes = [2, 32], strides = [1, 1]} : vector<2x64xf32> to vector<2x32xf32>
    %c96 = arith.constant 96 : index
    %c0_18 = arith.constant 0 : index
    %31 = vector.load %arg1[%c96, %c0_18] : memref<224x64xf32, #tpu.memory_space<vmem>>, vector<32x32xf32>
    %cst_19 = arith.constant dense<0.000000e+00> : vector<2x32xf32>
    %32 = tpu.matmul %29, %31, %cst_19 {dimension_numbers = #tpu.dot_dimension_numbers<[1], [0], [0], [1], [0, 0, 1, 1], [], []>} : vector<2x32xf32>, vector<32x32xf32>, vector<2x32xf32> -> vector<2x32xf32>
    %33 = vector.broadcast %3 : vector<1x32xf32> to vector<2x32xf32>
    %34 = arith.addf %32, %33 : vector<2x32xf32>
    %c160 = arith.constant 160 : index
    %c0_20 = arith.constant 0 : index
    %35 = vector.load %arg1[%c160, %c0_20] : memref<224x64xf32, #tpu.memory_space<vmem>>, vector<32x1xf32>
    %cst_21 = arith.constant dense<0.000000e+00> : vector<2x1xf32>
    %36 = tpu.matmul %34, %35, %cst_21 {dimension_numbers = #tpu.dot_dimension_numbers<[1], [0], [0], [1], [0, 0, 1, 1], [], []>} : vector<2x32xf32>, vector<32x1xf32>, vector<2x1xf32> -> vector<2x1xf32>
    %37 = vector.broadcast %4 : vector<1x1xf32> to vector<2x1xf32>
    %38 = arith.addf %36, %37 : vector<2x1xf32>
    %c128 = arith.constant 128 : index
    %c0_22 = arith.constant 0 : index
    %39 = vector.load %arg1[%c128, %c0_22] : memref<224x64xf32, #tpu.memory_space<vmem>>, vector<32x32xf32>
    %cst_23 = arith.constant dense<0.000000e+00> : vector<2x32xf32>
    %40 = tpu.matmul %30, %39, %cst_23 {dimension_numbers = #tpu.dot_dimension_numbers<[1], [0], [0], [1], [0, 0, 1, 1], [], []>} : vector<2x32xf32>, vector<32x32xf32>, vector<2x32xf32> -> vector<2x32xf32>
    %41 = vector.broadcast %5 : vector<1x32xf32> to vector<2x32xf32>
    %42 = arith.addf %40, %41 : vector<2x32xf32>
    %cst_24 = arith.constant dense<0xFF800000> : vector<2xf32>
    %43 = vector.multi_reduction <maximumf>, %42, %cst_24 [1] : vector<2x32xf32> to vector<2xf32>
    %44 = vector.shape_cast %43 : vector<2xf32> to vector<2x1xf32>
    %45 = vector.broadcast %44 : vector<2x1xf32> to vector<2x32xf32>
    %46 = arith.subf %42, %45 : vector<2x32xf32>
    %47 = math.exp %46 : vector<2x32xf32>
    %cst_25 = arith.constant dense<0.000000e+00> : vector<2xf32>
    %48 = vector.multi_reduction <add>, %47, %cst_25 [1] : vector<2x32xf32> to vector<2xf32>
    %49 = vector.shape_cast %48 : vector<2xf32> to vector<2x1xf32>
    %50 = math.log %49 : vector<2x1xf32>
    %51 = arith.addf %50, %44 : vector<2x1xf32>
    %52 = vector.broadcast %51 : vector<2x1xf32> to vector<2x32xf32>
    %53 = arith.subf %42, %52 : vector<2x32xf32>
    %c16 = arith.constant 16 : index
    %c0_26 = arith.constant 0 : index
    %54 = vector.load %arg1[%c16, %c0_26] : memref<224x64xf32, #tpu.memory_space<vmem>>, vector<16x16xf32>
    %cst_27 = arith.constant dense<0.000000e+00> : vector<2x16xf32>
    %55 = tpu.matmul %0, %54, %cst_27 {dimension_numbers = #tpu.dot_dimension_numbers<[1], [0], [0], [1], [0, 0, 1, 1], [], []>} : vector<2x16xf32>, vector<16x16xf32>, vector<2x16xf32> -> vector<2x16xf32>
    %56 = vector.broadcast %7 : vector<1x1xf32> to vector<2x1xf32>
    %57 = arith.mulf %56, %38 : vector<2x1xf32>
    %58 = vector.broadcast %57 : vector<2x1xf32> to vector<2x16xf32>
    %59 = arith.addf %55, %58 : vector<2x16xf32>
    %c192 = arith.constant 192 : index
    %c0_28 = arith.constant 0 : index
    %60 = vector.load %arg1[%c192, %c0_28] : memref<224x64xf32, #tpu.memory_space<vmem>>, vector<32x16xf32>
    %cst_29 = arith.constant dense<0.000000e+00> : vector<2x16xf32>
    %61 = tpu.matmul %42, %60, %cst_29 {dimension_numbers = #tpu.dot_dimension_numbers<[1], [0], [0], [1], [0, 0, 1, 1], [], []>} : vector<2x32xf32>, vector<32x16xf32>, vector<2x16xf32> -> vector<2x16xf32>
    %62 = arith.addf %59, %61 : vector<2x16xf32>
    %63 = vector.broadcast %6 : vector<1x16xf32> to vector<2x16xf32>
    %64 = arith.addf %62, %63 : vector<2x16xf32>
    %65 = math.tanh %64 : vector<2x16xf32>
    %c0_30 = arith.constant 0 : index
    %c0_31 = arith.constant 0 : index
    %66 = vector.load %arg3[%c0_30, %c0_31] : memref<4x32xf32, #tpu.memory_space<vmem>>, vector<2x32xf32>
    tpu.vector_store %arg3[%c0_30, %c0_31], %53 {strides = array<i32>} : memref<4x32xf32, #tpu.memory_space<vmem>>, vector<2x32xf32>,
    %67 = vector.shape_cast %38 : vector<2x1xf32> to vector<2x1xf32>
    %68 = vector.broadcast %67 : vector<2x1xf32> to vector<2x32xf32>
    %c2_32 = arith.constant 2 : index
    %c0_33 = arith.constant 0 : index
    %69 = vector.load %arg3[%c2_32, %c0_33] : memref<4x32xf32, #tpu.memory_space<vmem>>, vector<2x32xf32>
    tpu.vector_store %arg3[%c2_32, %c0_33], %68 {strides = array<i32>} : memref<4x32xf32, #tpu.memory_space<vmem>>, vector<2x32xf32>,
    %c32 = arith.constant 32 : index
    %c0_34 = arith.constant 0 : index
    %70 = vector.load %arg1[%c32, %c0_34] : memref<224x64xf32, #tpu.memory_space<vmem>>, vector<16x48xf32>
    %71 = vector.extract_strided_slice %8 {offsets = [0, 0], sizes = [1, 16], strides = [1, 1]} : vector<1x48xf32> to vector<1x16xf32>
    %72 = vector.extract_strided_slice %8 {offsets = [0, 16], sizes = [1, 16], strides = [1, 1]} : vector<1x48xf32> to vector<1x16xf32>
    %73 = vector.extract_strided_slice %8 {offsets = [0, 32], sizes = [1, 16], strides = [1, 1]} : vector<1x48xf32> to vector<1x16xf32>
    %cst_35 = arith.constant dense<0.000000e+00> : vector<2x48xf32>
    %74 = tpu.matmul %65, %70, %cst_35 {dimension_numbers = #tpu.dot_dimension_numbers<[1], [0], [0], [1], [0, 0, 1, 1], [], []>} : vector<2x16xf32>, vector<16x48xf32>, vector<2x48xf32> -> vector<2x48xf32>
    %75 = vector.extract_strided_slice %74 {offsets = [0, 0], sizes = [2, 16], strides = [1, 1]} : vector<2x48xf32> to vector<2x16xf32>
    %76 = vector.broadcast %71 : vector<1x16xf32> to vector<2x16xf32>
    %77 = arith.addf %76, %75 : vector<2x16xf32>
    %78 = arith.negf %77 : vector<2x16xf32>
    %79 = math.exp %78 : vector<2x16xf32>
    %cst_36 = arith.constant 1.000000e+00 : f32
    %80 = vector.broadcast %cst_36 : f32 to vector<2x16xf32>
    %81 = arith.addf %80, %79 : vector<2x16xf32>
    %82 = arith.divf %80, %81 : vector<2x16xf32>
    %83 = vector.extract_strided_slice %74 {offsets = [0, 16], sizes = [2, 16], strides = [1, 1]} : vector<2x48xf32> to vector<2x16xf32>
    %84 = vector.broadcast %72 : vector<1x16xf32> to vector<2x16xf32>
    %85 = arith.addf %84, %83 : vector<2x16xf32>
    %86 = arith.negf %85 : vector<2x16xf32>
    %87 = math.exp %86 : vector<2x16xf32>
    %cst_37 = arith.constant 1.000000e+00 : f32
    %88 = vector.broadcast %cst_37 : f32 to vector<2x16xf32>
    %89 = arith.addf %88, %87 : vector<2x16xf32>
    %90 = arith.divf %88, %89 : vector<2x16xf32>
    %91 = vector.extract_strided_slice %74 {offsets = [0, 32], sizes = [2, 16], strides = [1, 1]} : vector<2x48xf32> to vector<2x16xf32>
    %92 = vector.broadcast %9 : vector<1x16xf32> to vector<2x16xf32>
    %93 = arith.addf %91, %92 : vector<2x16xf32>
    %94 = arith.mulf %82, %93 : vector<2x16xf32>
    %95 = vector.broadcast %73 : vector<1x16xf32> to vector<2x16xf32>
    %96 = arith.addf %95, %94 : vector<2x16xf32>
    %97 = math.tanh %96 : vector<2x16xf32>
    %cst_38 = arith.constant 1.000000e+00 : f32
    %98 = vector.broadcast %cst_38 : f32 to vector<2x16xf32>
    %99 = arith.subf %98, %90 : vector<2x16xf32>
    %100 = arith.mulf %99, %97 : vector<2x16xf32>
    %101 = arith.mulf %90, %65 : vector<2x16xf32>
    %102 = arith.addf %100, %101 : vector<2x16xf32>
    %c0_39 = arith.constant 0 : index
    %c0_40 = arith.constant 0 : index
    %103 = vector.load %arg5[%c0_39, %c0_40] : memref<20x16xf32, #tpu.memory_space<vmem>>, vector<2x16xf32>
    tpu.vector_store %arg5[%c0_39, %c0_40], %102 {strides = array<i32>} : memref<20x16xf32, #tpu.memory_space<vmem>>, vector<2x16xf32>,
    %cst_41 = arith.constant dense<0.000000e+00> : vector<2x48xf32>
    %104 = tpu.matmul %102, %70, %cst_41 {dimension_numbers = #tpu.dot_dimension_numbers<[1], [0], [0], [1], [0, 0, 1, 1], [], []>} : vector<2x16xf32>, vector<16x48xf32>, vector<2x48xf32> -> vector<2x48xf32>
    %105 = vector.extract_strided_slice %104 {offsets = [0, 0], sizes = [2, 16], strides = [1, 1]} : vector<2x48xf32> to vector<2x16xf32>
    %106 = vector.broadcast %71 : vector<1x16xf32> to vector<2x16xf32>
    %107 = arith.addf %106, %105 : vector<2x16xf32>
    %108 = arith.negf %107 : vector<2x16xf32>
    %109 = math.exp %108 : vector<2x16xf32>
    %cst_42 = arith.constant 1.000000e+00 : f32
    %110 = vector.broadcast %cst_42 : f32 to vector<2x16xf32>
    %111 = arith.addf %110, %109 : vector<2x16xf32>
    %112 = arith.divf %110, %111 : vector<2x16xf32>
    %113 = vector.extract_strided_slice %104 {offsets = [0, 16], sizes = [2, 16], strides = [1, 1]} : vector<2x48xf32> to vector<2x16xf32>
    %114 = vector.broadcast %72 : vector<1x16xf32> to vector<2x16xf32>
    %115 = arith.addf %114, %113 : vector<2x16xf32>
    %116 = arith.negf %115 : vector<2x16xf32>
    %117 = math.exp %116 : vector<2x16xf32>
    %cst_43 = arith.constant 1.000000e+00 : f32
    %118 = vector.broadcast %cst_43 : f32 to vector<2x16xf32>
    %119 = arith.addf %118, %117 : vector<2x16xf32>
    %120 = arith.divf %118, %119 : vector<2x16xf32>
    %121 = vector.extract_strided_slice %104 {offsets = [0, 32], sizes = [2, 16], strides = [1, 1]} : vector<2x48xf32> to vector<2x16xf32>
    %122 = vector.broadcast %9 : vector<1x16xf32> to vector<2x16xf32>
    %123 = arith.addf %121, %122 : vector<2x16xf32>
    %124 = arith.mulf %112, %123 : vector<2x16xf32>
    %125 = vector.broadcast %73 : vector<1x16xf32> to vector<2x16xf32>
    %126 = arith.addf %125, %124 : vector<2x16xf32>
    %127 = math.tanh %126 : vector<2x16xf32>
    %cst_44 = arith.constant 1.000000e+00 : f32
    %128 = vector.broadcast %cst_44 : f32 to vector<2x16xf32>
    %129 = arith.subf %128, %120 : vector<2x16xf32>
    %130 = arith.mulf %129, %127 : vector<2x16xf32>
    %131 = arith.mulf %120, %102 : vector<2x16xf32>
    %132 = arith.addf %130, %131 : vector<2x16xf32>
    %c2_45 = arith.constant 2 : index
    %c0_46 = arith.constant 0 : index
    %133 = vector.load %arg5[%c2_45, %c0_46] : memref<20x16xf32, #tpu.memory_space<vmem>>, vector<2x16xf32>
    tpu.vector_store %arg5[%c2_45, %c0_46], %132 {strides = array<i32>} : memref<20x16xf32, #tpu.memory_space<vmem>>, vector<2x16xf32>,
    %cst_47 = arith.constant dense<0.000000e+00> : vector<2x48xf32>
    %134 = tpu.matmul %132, %70, %cst_47 {dimension_numbers = #tpu.dot_dimension_numbers<[1], [0], [0], [1], [0, 0, 1, 1], [], []>} : vector<2x16xf32>, vector<16x48xf32>, vector<2x48xf32> -> vector<2x48xf32>
    %135 = vector.extract_strided_slice %134 {offsets = [0, 0], sizes = [2, 16], strides = [1, 1]} : vector<2x48xf32> to vector<2x16xf32>
    %136 = vector.broadcast %71 : vector<1x16xf32> to vector<2x16xf32>
    %137 = arith.addf %136, %135 : vector<2x16xf32>
    %138 = arith.negf %137 : vector<2x16xf32>
    %139 = math.exp %138 : vector<2x16xf32>
    %cst_48 = arith.constant 1.000000e+00 : f32
    %140 = vector.broadcast %cst_48 : f32 to vector<2x16xf32>
    %141 = arith.addf %140, %139 : vector<2x16xf32>
    %142 = arith.divf %140, %141 : vector<2x16xf32>
    %143 = vector.extract_strided_slice %134 {offsets = [0, 16], sizes = [2, 16], strides = [1, 1]} : vector<2x48xf32> to vector<2x16xf32>
    %144 = vector.broadcast %72 : vector<1x16xf32> to vector<2x16xf32>
    %145 = arith.addf %144, %143 : vector<2x16xf32>
    %146 = arith.negf %145 : vector<2x16xf32>
    %147 = math.exp %146 : vector<2x16xf32>
    %cst_49 = arith.constant 1.000000e+00 : f32
    %148 = vector.broadcast %cst_49 : f32 to vector<2x16xf32>
    %149 = arith.addf %148, %147 : vector<2x16xf32>
    %150 = arith.divf %148, %149 : vector<2x16xf32>
    %151 = vector.extract_strided_slice %134 {offsets = [0, 32], sizes = [2, 16], strides = [1, 1]} : vector<2x48xf32> to vector<2x16xf32>
    %152 = vector.broadcast %9 : vector<1x16xf32> to vector<2x16xf32>
    %153 = arith.addf %151, %152 : vector<2x16xf32>
    %154 = arith.mulf %142, %153 : vector<2x16xf32>
    %155 = vector.broadcast %73 : vector<1x16xf32> to vector<2x16xf32>
    %156 = arith.addf %155, %154 : vector<2x16xf32>
    %157 = math.tanh %156 : vector<2x16xf32>
    %cst_50 = arith.constant 1.000000e+00 : f32
    %158 = vector.broadcast %cst_50 : f32 to vector<2x16xf32>
    %159 = arith.subf %158, %150 : vector<2x16xf32>
    %160 = arith.mulf %159, %157 : vector<2x16xf32>
    %161 = arith.mulf %150, %132 : vector<2x16xf32>
    %162 = arith.addf %160, %161 : vector<2x16xf32>
    %c4_51 = arith.constant 4 : index
    %c0_52 = arith.constant 0 : index
    %163 = vector.load %arg5[%c4_51, %c0_52] : memref<20x16xf32, #tpu.memory_space<vmem>>, vector<2x16xf32>
    tpu.vector_store %arg5[%c4_51, %c0_52], %162 {strides = array<i32>} : memref<20x16xf32, #tpu.memory_space<vmem>>, vector<2x16xf32>,
    %cst_53 = arith.constant dense<0.000000e+00> : vector<2x48xf32>
    %164 = tpu.matmul %162, %70, %cst_53 {dimension_numbers = #tpu.dot_dimension_numbers<[1], [0], [0], [1], [0, 0, 1, 1], [], []>} : vector<2x16xf32>, vector<16x48xf32>, vector<2x48xf32> -> vector<2x48xf32>
    %165 = vector.extract_strided_slice %164 {offsets = [0, 0], sizes = [2, 16], strides = [1, 1]} : vector<2x48xf32> to vector<2x16xf32>
    %166 = vector.broadcast %71 : vector<1x16xf32> to vector<2x16xf32>
    %167 = arith.addf %166, %165 : vector<2x16xf32>
    %168 = arith.negf %167 : vector<2x16xf32>
    %169 = math.exp %168 : vector<2x16xf32>
    %cst_54 = arith.constant 1.000000e+00 : f32
    %170 = vector.broadcast %cst_54 : f32 to vector<2x16xf32>
    %171 = arith.addf %170, %169 : vector<2x16xf32>
    %172 = arith.divf %170, %171 : vector<2x16xf32>
    %173 = vector.extract_strided_slice %164 {offsets = [0, 16], sizes = [2, 16], strides = [1, 1]} : vector<2x48xf32> to vector<2x16xf32>
    %174 = vector.broadcast %72 : vector<1x16xf32> to vector<2x16xf32>
    %175 = arith.addf %174, %173 : vector<2x16xf32>
    %176 = arith.negf %175 : vector<2x16xf32>
    %177 = math.exp %176 : vector<2x16xf32>
    %cst_55 = arith.constant 1.000000e+00 : f32
    %178 = vector.broadcast %cst_55 : f32 to vector<2x16xf32>
    %179 = arith.addf %178, %177 : vector<2x16xf32>
    %180 = arith.divf %178, %179 : vector<2x16xf32>
    %181 = vector.extract_strided_slice %164 {offsets = [0, 32], sizes = [2, 16], strides = [1, 1]} : vector<2x48xf32> to vector<2x16xf32>
    %182 = vector.broadcast %9 : vector<1x16xf32> to vector<2x16xf32>
    %183 = arith.addf %181, %182 : vector<2x16xf32>
    %184 = arith.mulf %172, %183 : vector<2x16xf32>
    %185 = vector.broadcast %73 : vector<1x16xf32> to vector<2x16xf32>
    %186 = arith.addf %185, %184 : vector<2x16xf32>
    %187 = math.tanh %186 : vector<2x16xf32>
    %cst_56 = arith.constant 1.000000e+00 : f32
    %188 = vector.broadcast %cst_56 : f32 to vector<2x16xf32>
    %189 = arith.subf %188, %180 : vector<2x16xf32>
    %190 = arith.mulf %189, %187 : vector<2x16xf32>
    %191 = arith.mulf %180, %162 : vector<2x16xf32>
    %192 = arith.addf %190, %191 : vector<2x16xf32>
    %c6_57 = arith.constant 6 : index
    %c0_58 = arith.constant 0 : index
    %193 = vector.load %arg5[%c6_57, %c0_58] : memref<20x16xf32, #tpu.memory_space<vmem>>, vector<2x16xf32>
    tpu.vector_store %arg5[%c6_57, %c0_58], %192 {strides = array<i32>} : memref<20x16xf32, #tpu.memory_space<vmem>>, vector<2x16xf32>,
    %cst_59 = arith.constant dense<0.000000e+00> : vector<2x48xf32>
    %194 = tpu.matmul %192, %70, %cst_59 {dimension_numbers = #tpu.dot_dimension_numbers<[1], [0], [0], [1], [0, 0, 1, 1], [], []>} : vector<2x16xf32>, vector<16x48xf32>, vector<2x48xf32> -> vector<2x48xf32>
    %195 = vector.extract_strided_slice %194 {offsets = [0, 0], sizes = [2, 16], strides = [1, 1]} : vector<2x48xf32> to vector<2x16xf32>
    %196 = vector.broadcast %71 : vector<1x16xf32> to vector<2x16xf32>
    %197 = arith.addf %196, %195 : vector<2x16xf32>
    %198 = arith.negf %197 : vector<2x16xf32>
    %199 = math.exp %198 : vector<2x16xf32>
    %cst_60 = arith.constant 1.000000e+00 : f32
    %200 = vector.broadcast %cst_60 : f32 to vector<2x16xf32>
    %201 = arith.addf %200, %199 : vector<2x16xf32>
    %202 = arith.divf %200, %201 : vector<2x16xf32>
    %203 = vector.extract_strided_slice %194 {offsets = [0, 16], sizes = [2, 16], strides = [1, 1]} : vector<2x48xf32> to vector<2x16xf32>
    %204 = vector.broadcast %72 : vector<1x16xf32> to vector<2x16xf32>
    %205 = arith.addf %204, %203 : vector<2x16xf32>
    %206 = arith.negf %205 : vector<2x16xf32>
    %207 = math.exp %206 : vector<2x16xf32>
    %cst_61 = arith.constant 1.000000e+00 : f32
    %208 = vector.broadcast %cst_61 : f32 to vector<2x16xf32>
    %209 = arith.addf %208, %207 : vector<2x16xf32>
    %210 = arith.divf %208, %209 : vector<2x16xf32>
    %211 = vector.extract_strided_slice %194 {offsets = [0, 32], sizes = [2, 16], strides = [1, 1]} : vector<2x48xf32> to vector<2x16xf32>
    %212 = vector.broadcast %9 : vector<1x16xf32> to vector<2x16xf32>
    %213 = arith.addf %211, %212 : vector<2x16xf32>
    %214 = arith.mulf %202, %213 : vector<2x16xf32>
    %215 = vector.broadcast %73 : vector<1x16xf32> to vector<2x16xf32>
    %216 = arith.addf %215, %214 : vector<2x16xf32>
    %217 = math.tanh %216 : vector<2x16xf32>
    %cst_62 = arith.constant 1.000000e+00 : f32
    %218 = vector.broadcast %cst_62 : f32 to vector<2x16xf32>
    %219 = arith.subf %218, %210 : vector<2x16xf32>
    %220 = arith.mulf %219, %217 : vector<2x16xf32>
    %221 = arith.mulf %210, %192 : vector<2x16xf32>
    %222 = arith.addf %220, %221 : vector<2x16xf32>
    %c8_63 = arith.constant 8 : index
    %c0_64 = arith.constant 0 : index
    %223 = vector.load %arg5[%c8_63, %c0_64] : memref<20x16xf32, #tpu.memory_space<vmem>>, vector<2x16xf32>
    tpu.vector_store %arg5[%c8_63, %c0_64], %222 {strides = array<i32>} : memref<20x16xf32, #tpu.memory_space<vmem>>, vector<2x16xf32>,
    %cst_65 = arith.constant dense<0.000000e+00> : vector<2x48xf32>
    %224 = tpu.matmul %222, %70, %cst_65 {dimension_numbers = #tpu.dot_dimension_numbers<[1], [0], [0], [1], [0, 0, 1, 1], [], []>} : vector<2x16xf32>, vector<16x48xf32>, vector<2x48xf32> -> vector<2x48xf32>
    %225 = vector.extract_strided_slice %224 {offsets = [0, 0], sizes = [2, 16], strides = [1, 1]} : vector<2x48xf32> to vector<2x16xf32>
    %226 = vector.broadcast %71 : vector<1x16xf32> to vector<2x16xf32>
    %227 = arith.addf %226, %225 : vector<2x16xf32>
    %228 = arith.negf %227 : vector<2x16xf32>
    %229 = math.exp %228 : vector<2x16xf32>
    %cst_66 = arith.constant 1.000000e+00 : f32
    %230 = vector.broadcast %cst_66 : f32 to vector<2x16xf32>
    %231 = arith.addf %230, %229 : vector<2x16xf32>
    %232 = arith.divf %230, %231 : vector<2x16xf32>
    %233 = vector.extract_strided_slice %224 {offsets = [0, 16], sizes = [2, 16], strides = [1, 1]} : vector<2x48xf32> to vector<2x16xf32>
    %234 = vector.broadcast %72 : vector<1x16xf32> to vector<2x16xf32>
    %235 = arith.addf %234, %233 : vector<2x16xf32>
    %236 = arith.negf %235 : vector<2x16xf32>
    %237 = math.exp %236 : vector<2x16xf32>
    %cst_67 = arith.constant 1.000000e+00 : f32
    %238 = vector.broadcast %cst_67 : f32 to vector<2x16xf32>
    %239 = arith.addf %238, %237 : vector<2x16xf32>
    %240 = arith.divf %238, %239 : vector<2x16xf32>
    %241 = vector.extract_strided_slice %224 {offsets = [0, 32], sizes = [2, 16], strides = [1, 1]} : vector<2x48xf32> to vector<2x16xf32>
    %242 = vector.broadcast %9 : vector<1x16xf32> to vector<2x16xf32>
    %243 = arith.addf %241, %242 : vector<2x16xf32>
    %244 = arith.mulf %232, %243 : vector<2x16xf32>
    %245 = vector.broadcast %73 : vector<1x16xf32> to vector<2x16xf32>
    %246 = arith.addf %245, %244 : vector<2x16xf32>
    %247 = math.tanh %246 : vector<2x16xf32>
    %cst_68 = arith.constant 1.000000e+00 : f32
    %248 = vector.broadcast %cst_68 : f32 to vector<2x16xf32>
    %249 = arith.subf %248, %240 : vector<2x16xf32>
    %250 = arith.mulf %249, %247 : vector<2x16xf32>
    %251 = arith.mulf %240, %222 : vector<2x16xf32>
    %252 = arith.addf %250, %251 : vector<2x16xf32>
    %c10 = arith.constant 10 : index
    %c0_69 = arith.constant 0 : index
    %253 = vector.load %arg5[%c10, %c0_69] : memref<20x16xf32, #tpu.memory_space<vmem>>, vector<2x16xf32>
    tpu.vector_store %arg5[%c10, %c0_69], %252 {strides = array<i32>} : memref<20x16xf32, #tpu.memory_space<vmem>>, vector<2x16xf32>,
    %cst_70 = arith.constant dense<0.000000e+00> : vector<2x48xf32>
    %254 = tpu.matmul %252, %70, %cst_70 {dimension_numbers = #tpu.dot_dimension_numbers<[1], [0], [0], [1], [0, 0, 1, 1], [], []>} : vector<2x16xf32>, vector<16x48xf32>, vector<2x48xf32> -> vector<2x48xf32>
    %255 = vector.extract_strided_slice %254 {offsets = [0, 0], sizes = [2, 16], strides = [1, 1]} : vector<2x48xf32> to vector<2x16xf32>
    %256 = vector.broadcast %71 : vector<1x16xf32> to vector<2x16xf32>
    %257 = arith.addf %256, %255 : vector<2x16xf32>
    %258 = arith.negf %257 : vector<2x16xf32>
    %259 = math.exp %258 : vector<2x16xf32>
    %cst_71 = arith.constant 1.000000e+00 : f32
    %260 = vector.broadcast %cst_71 : f32 to vector<2x16xf32>
    %261 = arith.addf %260, %259 : vector<2x16xf32>
    %262 = arith.divf %260, %261 : vector<2x16xf32>
    %263 = vector.extract_strided_slice %254 {offsets = [0, 16], sizes = [2, 16], strides = [1, 1]} : vector<2x48xf32> to vector<2x16xf32>
    %264 = vector.broadcast %72 : vector<1x16xf32> to vector<2x16xf32>
    %265 = arith.addf %264, %263 : vector<2x16xf32>
    %266 = arith.negf %265 : vector<2x16xf32>
    %267 = math.exp %266 : vector<2x16xf32>
    %cst_72 = arith.constant 1.000000e+00 : f32
    %268 = vector.broadcast %cst_72 : f32 to vector<2x16xf32>
    %269 = arith.addf %268, %267 : vector<2x16xf32>
    %270 = arith.divf %268, %269 : vector<2x16xf32>
    %271 = vector.extract_strided_slice %254 {offsets = [0, 32], sizes = [2, 16], strides = [1, 1]} : vector<2x48xf32> to vector<2x16xf32>
    %272 = vector.broadcast %9 : vector<1x16xf32> to vector<2x16xf32>
    %273 = arith.addf %271, %272 : vector<2x16xf32>
    %274 = arith.mulf %262, %273 : vector<2x16xf32>
    %275 = vector.broadcast %73 : vector<1x16xf32> to vector<2x16xf32>
    %276 = arith.addf %275, %274 : vector<2x16xf32>
    %277 = math.tanh %276 : vector<2x16xf32>
    %cst_73 = arith.constant 1.000000e+00 : f32
    %278 = vector.broadcast %cst_73 : f32 to vector<2x16xf32>
    %279 = arith.subf %278, %270 : vector<2x16xf32>
    %280 = arith.mulf %279, %277 : vector<2x16xf32>
    %281 = arith.mulf %270, %252 : vector<2x16xf32>
    %282 = arith.addf %280, %281 : vector<2x16xf32>
    %c12 = arith.constant 12 : index
    %c0_74 = arith.constant 0 : index
    %283 = vector.load %arg5[%c12, %c0_74] : memref<20x16xf32, #tpu.memory_space<vmem>>, vector<2x16xf32>
    tpu.vector_store %arg5[%c12, %c0_74], %282 {strides = array<i32>} : memref<20x16xf32, #tpu.memory_space<vmem>>, vector<2x16xf32>,
    %cst_75 = arith.constant dense<0.000000e+00> : vector<2x48xf32>
    %284 = tpu.matmul %282, %70, %cst_75 {dimension_numbers = #tpu.dot_dimension_numbers<[1], [0], [0], [1], [0, 0, 1, 1], [], []>} : vector<2x16xf32>, vector<16x48xf32>, vector<2x48xf32> -> vector<2x48xf32>
    %285 = vector.extract_strided_slice %284 {offsets = [0, 0], sizes = [2, 16], strides = [1, 1]} : vector<2x48xf32> to vector<2x16xf32>
    %286 = vector.broadcast %71 : vector<1x16xf32> to vector<2x16xf32>
    %287 = arith.addf %286, %285 : vector<2x16xf32>
    %288 = arith.negf %287 : vector<2x16xf32>
    %289 = math.exp %288 : vector<2x16xf32>
    %cst_76 = arith.constant 1.000000e+00 : f32
    %290 = vector.broadcast %cst_76 : f32 to vector<2x16xf32>
    %291 = arith.addf %290, %289 : vector<2x16xf32>
    %292 = arith.divf %290, %291 : vector<2x16xf32>
    %293 = vector.extract_strided_slice %284 {offsets = [0, 16], sizes = [2, 16], strides = [1, 1]} : vector<2x48xf32> to vector<2x16xf32>
    %294 = vector.broadcast %72 : vector<1x16xf32> to vector<2x16xf32>
    %295 = arith.addf %294, %293 : vector<2x16xf32>
    %296 = arith.negf %295 : vector<2x16xf32>
    %297 = math.exp %296 : vector<2x16xf32>
    %cst_77 = arith.constant 1.000000e+00 : f32
    %298 = vector.broadcast %cst_77 : f32 to vector<2x16xf32>
    %299 = arith.addf %298, %297 : vector<2x16xf32>
    %300 = arith.divf %298, %299 : vector<2x16xf32>
    %301 = vector.extract_strided_slice %284 {offsets = [0, 32], sizes = [2, 16], strides = [1, 1]} : vector<2x48xf32> to vector<2x16xf32>
    %302 = vector.broadcast %9 : vector<1x16xf32> to vector<2x16xf32>
    %303 = arith.addf %301, %302 : vector<2x16xf32>
    %304 = arith.mulf %292, %303 : vector<2x16xf32>
    %305 = vector.broadcast %73 : vector<1x16xf32> to vector<2x16xf32>
    %306 = arith.addf %305, %304 : vector<2x16xf32>
    %307 = math.tanh %306 : vector<2x16xf32>
    %cst_78 = arith.constant 1.000000e+00 : f32
    %308 = vector.broadcast %cst_78 : f32 to vector<2x16xf32>
    %309 = arith.subf %308, %300 : vector<2x16xf32>
    %310 = arith.mulf %309, %307 : vector<2x16xf32>
    %311 = arith.mulf %300, %282 : vector<2x16xf32>
    %312 = arith.addf %310, %311 : vector<2x16xf32>
    %c14 = arith.constant 14 : index
    %c0_79 = arith.constant 0 : index
    %313 = vector.load %arg5[%c14, %c0_79] : memref<20x16xf32, #tpu.memory_space<vmem>>, vector<2x16xf32>
    tpu.vector_store %arg5[%c14, %c0_79], %312 {strides = array<i32>} : memref<20x16xf32, #tpu.memory_space<vmem>>, vector<2x16xf32>,
    %cst_80 = arith.constant dense<0.000000e+00> : vector<2x48xf32>
    %314 = tpu.matmul %312, %70, %cst_80 {dimension_numbers = #tpu.dot_dimension_numbers<[1], [0], [0], [1], [0, 0, 1, 1], [], []>} : vector<2x16xf32>, vector<16x48xf32>, vector<2x48xf32> -> vector<2x48xf32>
    %315 = vector.extract_strided_slice %314 {offsets = [0, 0], sizes = [2, 16], strides = [1, 1]} : vector<2x48xf32> to vector<2x16xf32>
    %316 = vector.broadcast %71 : vector<1x16xf32> to vector<2x16xf32>
    %317 = arith.addf %316, %315 : vector<2x16xf32>
    %318 = arith.negf %317 : vector<2x16xf32>
    %319 = math.exp %318 : vector<2x16xf32>
    %cst_81 = arith.constant 1.000000e+00 : f32
    %320 = vector.broadcast %cst_81 : f32 to vector<2x16xf32>
    %321 = arith.addf %320, %319 : vector<2x16xf32>
    %322 = arith.divf %320, %321 : vector<2x16xf32>
    %323 = vector.extract_strided_slice %314 {offsets = [0, 16], sizes = [2, 16], strides = [1, 1]} : vector<2x48xf32> to vector<2x16xf32>
    %324 = vector.broadcast %72 : vector<1x16xf32> to vector<2x16xf32>
    %325 = arith.addf %324, %323 : vector<2x16xf32>
    %326 = arith.negf %325 : vector<2x16xf32>
    %327 = math.exp %326 : vector<2x16xf32>
    %cst_82 = arith.constant 1.000000e+00 : f32
    %328 = vector.broadcast %cst_82 : f32 to vector<2x16xf32>
    %329 = arith.addf %328, %327 : vector<2x16xf32>
    %330 = arith.divf %328, %329 : vector<2x16xf32>
    %331 = vector.extract_strided_slice %314 {offsets = [0, 32], sizes = [2, 16], strides = [1, 1]} : vector<2x48xf32> to vector<2x16xf32>
    %332 = vector.broadcast %9 : vector<1x16xf32> to vector<2x16xf32>
    %333 = arith.addf %331, %332 : vector<2x16xf32>
    %334 = arith.mulf %322, %333 : vector<2x16xf32>
    %335 = vector.broadcast %73 : vector<1x16xf32> to vector<2x16xf32>
    %336 = arith.addf %335, %334 : vector<2x16xf32>
    %337 = math.tanh %336 : vector<2x16xf32>
    %cst_83 = arith.constant 1.000000e+00 : f32
    %338 = vector.broadcast %cst_83 : f32 to vector<2x16xf32>
    %339 = arith.subf %338, %330 : vector<2x16xf32>
    %340 = arith.mulf %339, %337 : vector<2x16xf32>
    %341 = arith.mulf %330, %312 : vector<2x16xf32>
    %342 = arith.addf %340, %341 : vector<2x16xf32>
    %c16_84 = arith.constant 16 : index
    %c0_85 = arith.constant 0 : index
    %343 = vector.load %arg5[%c16_84, %c0_85] : memref<20x16xf32, #tpu.memory_space<vmem>>, vector<2x16xf32>
    tpu.vector_store %arg5[%c16_84, %c0_85], %342 {strides = array<i32>} : memref<20x16xf32, #tpu.memory_space<vmem>>, vector<2x16xf32>,
    %cst_86 = arith.constant dense<0.000000e+00> : vector<2x48xf32>
    %344 = tpu.matmul %342, %70, %cst_86 {dimension_numbers = #tpu.dot_dimension_numbers<[1], [0], [0], [1], [0, 0, 1, 1], [], []>} : vector<2x16xf32>, vector<16x48xf32>, vector<2x48xf32> -> vector<2x48xf32>
    %345 = vector.extract_strided_slice %344 {offsets = [0, 0], sizes = [2, 16], strides = [1, 1]} : vector<2x48xf32> to vector<2x16xf32>
    %346 = vector.broadcast %71 : vector<1x16xf32> to vector<2x16xf32>
    %347 = arith.addf %346, %345 : vector<2x16xf32>
    %348 = arith.negf %347 : vector<2x16xf32>
    %349 = math.exp %348 : vector<2x16xf32>
    %cst_87 = arith.constant 1.000000e+00 : f32
    %350 = vector.broadcast %cst_87 : f32 to vector<2x16xf32>
    %351 = arith.addf %350, %349 : vector<2x16xf32>
    %352 = arith.divf %350, %351 : vector<2x16xf32>
    %353 = vector.extract_strided_slice %344 {offsets = [0, 16], sizes = [2, 16], strides = [1, 1]} : vector<2x48xf32> to vector<2x16xf32>
    %354 = vector.broadcast %72 : vector<1x16xf32> to vector<2x16xf32>
    %355 = arith.addf %354, %353 : vector<2x16xf32>
    %356 = arith.negf %355 : vector<2x16xf32>
    %357 = math.exp %356 : vector<2x16xf32>
    %cst_88 = arith.constant 1.000000e+00 : f32
    %358 = vector.broadcast %cst_88 : f32 to vector<2x16xf32>
    %359 = arith.addf %358, %357 : vector<2x16xf32>
    %360 = arith.divf %358, %359 : vector<2x16xf32>
    %361 = vector.extract_strided_slice %344 {offsets = [0, 32], sizes = [2, 16], strides = [1, 1]} : vector<2x48xf32> to vector<2x16xf32>
    %362 = vector.broadcast %9 : vector<1x16xf32> to vector<2x16xf32>
    %363 = arith.addf %361, %362 : vector<2x16xf32>
    %364 = arith.mulf %352, %363 : vector<2x16xf32>
    %365 = vector.broadcast %73 : vector<1x16xf32> to vector<2x16xf32>
    %366 = arith.addf %365, %364 : vector<2x16xf32>
    %367 = math.tanh %366 : vector<2x16xf32>
    %cst_89 = arith.constant 1.000000e+00 : f32
    %368 = vector.broadcast %cst_89 : f32 to vector<2x16xf32>
    %369 = arith.subf %368, %360 : vector<2x16xf32>
    %370 = arith.mulf %369, %367 : vector<2x16xf32>
    %371 = arith.mulf %360, %342 : vector<2x16xf32>
    %372 = arith.addf %370, %371 : vector<2x16xf32>
    %c18 = arith.constant 18 : index
    %c0_90 = arith.constant 0 : index
    %373 = vector.load %arg5[%c18, %c0_90] : memref<20x16xf32, #tpu.memory_space<vmem>>, vector<2x16xf32>
    tpu.vector_store %arg5[%c18, %c0_90], %372 {strides = array<i32>} : memref<20x16xf32, #tpu.memory_space<vmem>>, vector<2x16xf32>,
    %c0_91 = arith.constant 0 : index
    %c0_92 = arith.constant 0 : index
    %374 = vector.load %arg5[%c0_91, %c0_92] : memref<20x16xf32, #tpu.memory_space<vmem>>, vector<20x16xf32>
    %c48 = arith.constant 48 : index
    %c0_93 = arith.constant 0 : index
    %375 = vector.load %arg1[%c48, %c0_93] : memref<224x64xf32, #tpu.memory_space<vmem>>, vector<16x32xf32>
    %cst_94 = arith.constant dense<0.000000e+00> : vector<20x32xf32>
    %376 = tpu.matmul %374, %375, %cst_94 {dimension_numbers = #tpu.dot_dimension_numbers<[1], [0], [0], [1], [0, 0, 1, 1], [], []>} : vector<20x16xf32>, vector<16x32xf32>, vector<20x32xf32> -> vector<20x32xf32>
    %377 = vector.broadcast %10 : vector<1x32xf32> to vector<20x32xf32>
    %378 = arith.addf %376, %377 : vector<20x32xf32>
    %cst_95 = arith.constant dense<0xFF800000> : vector<20xf32>
    %379 = vector.multi_reduction <maximumf>, %378, %cst_95 [1] : vector<20x32xf32> to vector<20xf32>
    %380 = vector.shape_cast %379 : vector<20xf32> to vector<20x1xf32>
    %381 = vector.broadcast %380 : vector<20x1xf32> to vector<20x32xf32>
    %382 = arith.subf %378, %381 : vector<20x32xf32>
    %383 = math.exp %382 : vector<20x32xf32>
    %cst_96 = arith.constant dense<0.000000e+00> : vector<20xf32>
    %384 = vector.multi_reduction <add>, %383, %cst_96 [1] : vector<20x32xf32> to vector<20xf32>
    %385 = vector.shape_cast %384 : vector<20xf32> to vector<20x1xf32>
    %386 = math.log %385 : vector<20x1xf32>
    %387 = arith.addf %386, %380 : vector<20x1xf32>
    %388 = vector.broadcast %387 : vector<20x1xf32> to vector<20x32xf32>
    %389 = arith.subf %378, %388 : vector<20x32xf32>
    %c0_97 = arith.constant 0 : index
    %c0_98 = arith.constant 0 : index
    %390 = vector.load %arg4[%c0_97, %c0_98] : memref<20x32xf32, #tpu.memory_space<vmem>>, vector<20x32xf32>
    tpu.vector_store %arg4[%c0_97, %c0_98], %389 {strides = array<i32>} : memref<20x32xf32, #tpu.memory_space<vmem>>, vector<20x32xf32>,
    return
  }
}

</mosaic_0001>

<bundles_post_ra>
// kernel: model_forward.1
= control target key start
LH: loop header
LB: loop body
LE: loop exit
PB: predicated region body
PF: predicated region fallthrough
CT: control target
= control target key end

     0   :  { %vm30_vm0 = vcmask 130048   ;;  %vm78_vm4 = vcmask 261120   ;;  %s1197_s22 = smov 96   ;;  %v1198_v62 = vmov 0   ;;  %s1199_s30 = smov 32   ;;  %vm365_vm14 = vcmask 123904   ;;  %s1516_s1 = inlined_call_operand.vmem [shape: f32[224,64], index: 1, kind: input, shape index: {}]   ;;  %s1517_s0 = inlined_call_operand.vmem [shape: f32[2,16], index: 0, kind: input, shape index: {}]   ;;  %s1518_s2 = inlined_call_operand.vmem [shape: f32[16,64], index: 2, kind: input, shape index: {}]   ;;  %s1519_s3 = inlined_call_operand.vmem [shape: f32[4,32], index: 3, kind: output, shape index: {0}]   ;;  %s1520_s4 = inlined_call_operand.vmem [shape: f32[20,32], index: 4, kind: output, shape index: {1}]  }
   0x1   :  { %v28_v0 = vld [vmem:[%s1516_s1 + $0x8] sm:$0xff]  ;;  %v27_v1 = vld [vmem:[%s1516_s1] sm:$0xff]  ;;  %v76_v3 = vld [vmem:[%s1516_s1 + $0x58] sm:$0xff]  ;;  %1099 = vset.pattern.permute.xlu0 %v1198_v62  ;;  %1100 = vset.pattern.permute.xlu1 %v1198_v62  ;;  %s1200_s7 = smov 16   ;;  %s1201_s10 = smov 112  }
   0x2   :  { %48 = vmatpush.msra.mxu0 %v28_v0  ;;  %v1236_v2 = vld [vmem:[%s1517_s0] sm:$0x3]  ;;  %v75_v4 = vld [vmem:[%s1516_s1 + $0x50] sm:$0xff]  ;;  %94 = vmatpush.msra.mxu2 %v76_v3  ;;  %v74_v5 = vld [vmem:[%s1516_s1 + $0x48] sm:$0xff] }
   0x3   :  { %v73_v6 = vld [vmem:[%s1516_s1 + $0x40] sm:$0xff]  ;;  %v124_v23 = vld [vmem:[%s1516_s1 + $0x78] sm:$0xff]  ;;  %v123_v24 = vld [vmem:[%s1516_s1 + $0x70] sm:$0xff] }
   0x4   :  { %49 = vmatpush.msra.mxu0 %v27_v1  ;;  %95 = vmatpush.msra.mxu2 %v75_v4  ;;  %v1101_v7 = vld [vmem:[%s1518_s2] ss:$0 sm:$0xff]  ;;  %v122_v25 = vld [vmem:[%s1516_s1 + $0x68] sm:$0xff]  ;;  %v1103_v27 = vld [vmem:[%s1518_s2 + $0x1] ss:$0 sm:$0xff] }
   0x5   :  { %1062 = vmatmul.msk.f32.vlgmr.msra.gmra.mxu0 %vm30_vm0, %v1236_v2  ;;  %v121_v26 = vld [vmem:[%s1516_s1 + $0x60] sm:$0xff]  ;;  %v180_v28 = vld [vmem:[%s1516_s1 + $0x98] sm:$0xff]  ;;  %v179_v29 = vld [vmem:[%s1516_s1 + $0x90] sm:$0xff] }
   0x6   :  { %96 = vmatpush.msra.mxu2 %v74_v5  ;;  %198 = vmatpush.msrb.mxu0 %v180_v28  ;;  %v178_v32 = vld [vmem:[%s1516_s1 + $0x88] sm:$0xff]  ;;  %v177_v34 = vld [vmem:[%s1516_s1 + $0x80] sm:$0xff]  ;;  %v152_v47 = vld [vmem:[%s1516_s1 + $0xb8] sm:$0xff] }
   0x7   :  { %v151_v48 = vld [vmem:[%s1516_s1 + $0xb0] sm:$0xff]  ;;  %169 = vmatpush.msra.mxu3 %v152_v47  ;;  %v150_v49 = vld [vmem:[%s1516_s1 + $0xa8] sm:$0xff]  ;;  %v149_v50 = vld [vmem:[%s1516_s1 + $0xa0] sm:$0xff] }
   0x8   :  { %97 = vmatpush.msra.mxu2 %v73_v6  ;;  %199 = vmatpush.msrb.mxu0 %v179_v29  ;;  %v252_v51 = vld [vmem:[%s1516_s1 + $0xd8] sm:$0xff]  ;;  %v251_v52 = vld [vmem:[%s1516_s1 + $0xd0] sm:$0xff]  ;;  %v1104_v54 = vld [vmem:[%s1518_s2 + $0x2] ss:$0 sm:$0xff] }
   0x9   :  { %170 = vmatpush.msra.mxu3 %v151_v48  ;;  %v250_v57 = vld [vmem:[%s1516_s1 + $0xc8] sm:$0xff]  ;;  %v249_v58 = vld [vmem:[%s1516_s1 + $0xc0] sm:$0xff]  ;;  %v221_v59 = vld [vmem:[%s1516_s1 + $0x18] sm:$0xff] }
   0xa   :  { %141 = vmatpush.msrb.mxu2 %v124_v23  ;;  %200 = vmatpush.msrb.mxu0 %v178_v32  ;;  %v220_v60 = vld [vmem:[%s1516_s1 + $0x10] sm:$0xff]  ;;  %v1105_v61 = vld [vmem:[%s1518_s2 + $0x4] ss:$0 sm:$0xff]  ;;  %v1106_v1 = vld [vmem:[%s1518_s2 + $0x3] ss:$0 sm:$0xff] }
   0xb   :  { %171 = vmatpush.msra.mxu3 %v150_v49  ;;  %v1341_v6 = vld [vmem:[%s1516_s1 + $0x28] sm:$0xff] }
   0xc   :  { %142 = vmatpush.msrb.mxu2 %v123_v24  ;;  %201 = vmatpush.msrb.mxu0 %v177_v34 }
   0xd   :  { %172 = vmatpush.msra.mxu3 %v149_v50  ;;  %450 = vmatpush.msra.mxu1 %v1341_v6 }
   0xe   :  { %143 = vmatpush.msrb.mxu2 %v122_v25  ;;  %383 = vmatpush.msra.mxu0 %v1341_v6 }
   0xf   :  { %243 = vmatpush.msrb.mxu3 %v221_v59 }
  0x10   :  { %144 = vmatpush.msrb.mxu2 %v121_v26 }
  0x11   :  { %244 = vmatpush.msrb.mxu3 %v220_v60 }
  0x82   :  { %v51_v8 = vpop.f32.mrf.mxu0 }
  0x83   :  { %v52_v9 = vadd.f32 %v1101_v7, %v51_v8  ;;  %v1346_v7 = vld [vmem:[%s1516_s1 + $0x20] sm:$0xff]  ;;  %v1109_v8 = vld [vmem:[%s1518_s2 + $0x8] ss:$0 sm:$0xff] }
  0x84   :  { %384 = vmatpush.msra.mxu0 %v1346_v7  ;;  %451 = vmatpush.msra.mxu1 %v1346_v7 }
  0x85   :  { %v1063_v10 = vmul.f32 -1.442695, %v52_v9  ;;  %335 = vrot.lane.b32.xlu1 %v1109_v8, %s1199_s30 }
  0x86   :  { %718 = vmatpush.msrb.mxu1 %v1341_v6 }
  0x87   :  { %1111 = vpow2.f32 %v1063_v10 }
  0x88   :  { %719 = vmatpush.msrb.mxu1 %v1346_v7 }
  0x8d   :  { %v1112_v11 = vpop.eup %1111 }
  0x8e   :  { %v57_v12 = vadd.f32 1.0, %v1112_v11  ;;  %v1108_v11 = vld [vmem:[%s1518_s2 + $0x5] ss:$0 sm:$0xff] }
  0x90   :  { %1113 = vrcp.f32 %v57_v12  ;;  %v69_v16 = vand.u32 2147483648, %v57_v12  ;;  %v67_v18 = vand.u32 2147483647, %v57_v12  ;;  %vm63_vm2 = vweird.f32 %v57_v12 }
  0x92   :  { %v70_v20 = vor.u32 1.1754944e-38, %v69_v16  ;;  %vm68_vm5 = vcmp.eq.f32.partialorder %v67_v18, 8.507059e+37 }
  0x96   :  { %v1114_v13 = vpop.eup %1113 }
  0x97   :  { %v59_v14 = vmul.f32 %v1114_v13, %v57_v12  ;;  %vm64_vm1 = vweird.f32 %v1114_v13 }
  0x98   :  { %vm65_vm3 = vmor %vm63_vm2, %vm64_vm1 }
  0x99   :  { %v60_v15 = vsub.f32 1.0, %v59_v14 }
  0x9b   :  { %v61_v17 = vmul.f32 %v1114_v13, %v60_v15 }
  0x9d   :  { %v62_v19 = vadd.f32 %v1114_v13, %v61_v17 }
  0x9f   :  { %v66_v21 = vsel %vm65_vm3, %v1114_v13, %v62_v19 }
  0xa0   :  { %v71_v22 = vsel %vm68_vm5, %v70_v20, %v66_v21  ;;  %v1381_v20 = vld [vmem:[%s1518_s2 + $0x7] ss:$0 sm:$0xff] }
  0xa1   :  { %1064 = vmatmul.msk.f32.vlgmr.msra.gmra.mxu2 %vm78_vm4, %v71_v22 }
  0xa2   :  { %268 = vmatpush.msra.mxu2 %v252_v51 }
  0xa4   :  { %269 = vmatpush.msra.mxu2 %v251_v52 }
  0xa6   :  { %270 = vmatpush.msra.mxu2 %v250_v57 }
  0xa8   :  { %271 = vmatpush.msra.mxu2 %v249_v58 }
  0xf7   :  { %v1374_v17 = vpop.permute.xlu1 %335 }
 0x124   :  { %v99_v30 = vpop.f32.mrf.mxu2 }
 0x125   :  { %v100_v31 = vadd.f32 %v1103_v27, %v99_v30 }
 0x127   :  { %v1065_v33 = vmul.f32 -1.442695, %v100_v31 }
 0x129   :  { %1115 = vpow2.f32 %v1065_v33 }
 0x12f   :  { %v1116_v35 = vpop.eup %1115 }
 0x130   :  { %v105_v36 = vadd.f32 1.0, %v1116_v35 }
 0x132   :  { %1117 = vrcp.f32 %v105_v36  ;;  %v117_v40 = vand.u32 2147483648, %v105_v36  ;;  %v115_v42 = vand.u32 2147483647, %v105_v36  ;;  %vm111_vm7 = vweird.f32 %v105_v36 }
 0x134   :  { %v118_v44 = vor.u32 1.1754944e-38, %v117_v40  ;;  %vm116_vm9 = vcmp.eq.f32.partialorder %v115_v42, 8.507059e+37 }
 0x138   :  { %v1118_v37 = vpop.eup %1117 }
 0x139   :  { %v107_v38 = vmul.f32 %v1118_v37, %v105_v36  ;;  %vm112_vm6 = vweird.f32 %v1118_v37 }
 0x13a   :  { %vm113_vm8 = vmor %vm111_vm7, %vm112_vm6 }
 0x13b   :  { %v108_v39 = vsub.f32 1.0, %v107_v38 }
 0x13d   :  { %v109_v41 = vmul.f32 %v1118_v37, %v108_v39 }
 0x13f   :  { %v110_v43 = vadd.f32 %v1118_v37, %v109_v41 }
 0x141   :  { %v114_v45 = vsel %vm113_vm8, %v1118_v37, %v110_v43 }
 0x142   :  { %v119_v46 = vsel %vm116_vm9, %v118_v44, %v114_v45 }
 0x143   :  { %182 = vrot.lane.b32.xlu0 %v119_v46, %s1197_s22  ;;  %1066 = vmatmul.msk.f32.vlgmr.msrb.gmra.mxu2 %vm78_vm4, %v119_v46 }
 0x144   :  { %517 = vmatpush.msrb.mxu2 %v1341_v6 }
 0x146   :  { %518 = vmatpush.msrb.mxu2 %v1346_v7 }
 0x1b5   :  { %v183_v53 = vpop.permute.xlu0 %182 }
 0x1b6   :  { %1068 = vmatmul.msk.f32.vlgmr.msrb.gmra.mxu0 %vm78_vm4, %v183_v53 }
 0x1b7   :  { %651 = vmatpush.msrb.mxu0 %v1341_v6 }
 0x1b9   :  { %652 = vmatpush.msrb.mxu0 %v1346_v7 }
 0x1c6   :  { %v146_v55 = vpop.f32.mrf.mxu2 }
 0x1c7   :  { %v147_v56 = vadd.f32 %v1104_v54, %v146_v55 }
 0x1c9   :  { %1067 = vmatmul.msk.f32.vlgmr.msra.gmra.mxu3 %vm78_vm4, %v147_v56 }
 0x1ca   :  { %306 = vmatpush.msra.mxu3 %v1341_v6 }
 0x1cc   :  { %307 = vmatpush.msra.mxu3 %v1346_v7 }
 0x1d1   :  { %1069 = vmatmul.msk.f32.vlgmr.msrb.gmra.mxu3 %vm30_vm0, %v1236_v2  ;;  %v1107_v2 = vld [vmem:[%s1518_s2 + $0x6] ss:$0 sm:$0xff] }
 0x1d2   :  { %584 = vmatpush.msrb.mxu3 %v1341_v6 }
 0x1d4   :  { %585 = vmatpush.msrb.mxu3 %v1346_v7 }
 0x233   :  { %v203_v63 = vpop.f32.mrf.mxu0 }
 0x234   :  { %v1325_v0 = vadd.f32 %v1105_v61, %v203_v63 }
 0x236   :  { %1070 = vmatmul.msk.f32.vlgmr.msra.gmra.mxu2 %vm78_vm4, %v1325_v0 }
 0x237   :  { %785 = vmatpush.msra.mxu2 %v1341_v6 }
 0x239   :  { %786 = vmatpush.msra.mxu2 %v1346_v7 }
 0x24c   :  { %v174_v3 = vpop.f32.mrf.mxu3 }
 0x24d   :  { %v1335_v4 = vadd.f32 %v1106_v1, %v174_v3 }
 0x24f   :  { %v223_v5 = vmul.f32 %v1107_v2, %v1335_v4 }
 0x251   :  { %226 = vperm.xlu0 %1099, %v223_v5  }
 0x254   :  { %v246_v9 = vpop.f32.mrf.mxu3 }
 0x2b9   :  { %v273_v13 = vpop.f32.mrf.mxu2 }
 0x2c3   :  { %v227_v10 = vpop.permute.xlu0 %226 }
 0x2c4   :  { %v247_v12 = vadd.f32 %v246_v9, %v227_v10 }
 0x2c6   :  { %v276_v14 = vadd.f32 %v273_v13, %v247_v12 }
 0x2c8   :  { %v278_v15 = vadd.f32 %v1108_v11, %v276_v14 }
 0x2ca   :  { %1119 = vtanh.f32 %v278_v15 }
 0x2d0   :  { %v1120_v16 = vpop.eup %1119 }
 0x2d1   :  { %1071 = vmatmul.msk.f32.vlgmr.msra.gmra.mxu3 %vm30_vm0, %v1120_v16 }
 0x2d2   :  { %852 = vmatpush.msra.mxu3 %v1341_v6 }
 0x2d4   :  { %853 = vmatpush.msra.mxu3 %v1346_v7 }
 0x354   :  { %v309_v18 = vpop.f32.mrf.mxu3 }
 0x355   :  { %v338_v19 = vadd.f32 %v1374_v17, %v309_v18  ;;  %v313_v21 = vadd.f32 %v1381_v20, %v309_v18 }
 0x357   :  { %340 = vrot.lane.b32.xlu1 %v338_v19, %s1197_s22  ;;  %v1072_v22 = vmul.f32 -1.442695, %v313_v21 }
 0x359   :  { %1121 = vpow2.f32 %v1072_v22 }
 0x35f   :  { %356 = vrot.lane.b32.xlu1 %v1120_v16, %s1200_s7  ;;  %v1122_v23 = vpop.eup %1121 }
 0x360   :  { %v317_v24 = vadd.f32 1.0, %v1122_v23 }
 0x362   :  { %1123 = vrcp.f32 %v317_v24  ;;  %v329_v30 = vand.u32 2147483648, %v317_v24  ;;  %vm323_vm11 = vweird.f32 %v317_v24  ;;  %v327_v31 = vand.u32 2147483647, %v317_v24 }
 0x364   :  { %v330_v33 = vor.u32 1.1754944e-38, %v329_v30  ;;  %vm328_vm13 = vcmp.eq.f32.partialorder %v327_v31, 8.507059e+37 }
 0x368   :  { %v1124_v25 = vpop.eup %1123 }
 0x369   :  { %v319_v26 = vmul.f32 %v1124_v25, %v317_v24  ;;  %vm324_vm10 = vweird.f32 %v1124_v25 }
 0x36a   :  { %vm325_vm12 = vmor %vm323_vm11, %vm324_vm10 }
 0x36b   :  { %v320_v27 = vsub.f32 1.0, %v319_v26 }
 0x36d   :  { %v321_v28 = vmul.f32 %v1124_v25, %v320_v27 }
 0x36f   :  { %v322_v29 = vadd.f32 %v1124_v25, %v321_v28 }
 0x371   :  { %v326_v32 = vsel %vm325_vm12, %v1124_v25, %v322_v29 }
 0x372   :  { %v331_v35 = vsel %vm328_vm13, %v330_v33, %v326_v32 }
 0x373   :  { %v350_v41 = vsub.f32 1.0, %v331_v35 }
 0x3c9   :  { %v341_v34 = vpop.permute.xlu1 %340 }
 0x3ca   :  { %v343_v36 = vmul.f32 %v341_v34, %v331_v35 }
 0x3cc   :  { %345 = vrot.lane.b32.xlu2 %v343_v36, %s1199_s30 }
 0x3d1   :  { %v357_v40 = vpop.permute.xlu1 %356 }
 0x3d2   :  { %v359_v43 = vmul.f32 %v357_v40, %v331_v35 }
 0x426   :  { %v346_v37 = vpop.permute.xlu2 %345 }
 0x427   :  { %v348_v38 = vadd.f32 %v1381_v20, %v346_v37 }
 0x429   :  { %1125 = vtanh.f32 %v348_v38 }
 0x42f   :  { %v1126_v39 = vpop.eup %1125 }
 0x430   :  { %352 = vrot.lane.b32.xlu2 %v1126_v39, %s1201_s10 }
 0x48a   :  { %v353_v42 = vpop.permute.xlu2 %352 }
 0x48b   :  { %v355_v44 = vmul.f32 %v353_v42, %v350_v41 }
 0x48d   :  { %v360_v45 = vadd.f32 %v359_v43, %v355_v44 }
 0x48f   :  { %362 = vrot.lane.b32.xlu2 %v360_v45, %s1201_s10 }
 0x4e9   :  { %v363_v46 = vpop.permute.xlu2 %362 }
 0x4ea   :  { %366 = vst.msk [vmem:[#allocation2] sm:$0x3] %vm365_vm14, %v363_v46  ;;  %1073 = vmatmul.msk.f32.vlgmr.msra.gmra.mxu0 %vm30_vm0, %v363_v46 }
 0x4eb   :  { %919 = vmatpush.msra.mxu0 %v1341_v6 }
 0x4ed   :  { %920 = vmatpush.msra.mxu0 %v1346_v7 }
 0x567   :  { %v386_v47 = vpop.f32.mrf.mxu0 }
 0x568   :  { %v409_v48 = vadd.f32 %v386_v47, %v1374_v17  ;;  %v389_v49 = vadd.f32 %v1381_v20, %v386_v47 }
 0x56a   :  { %411 = vrot.lane.b32.xlu0 %v409_v48, %s1197_s22  ;;  %v1074_v50 = vmul.f32 -1.442695, %v389_v49 }
 0x56c   :  { %1127 = vpow2.f32 %v1074_v50 }
 0x572   :  { %v1128_v51 = vpop.eup %1127 }
 0x573   :  { %v393_v52 = vadd.f32 1.0, %v1128_v51 }
 0x575   :  { %1129 = vrcp.f32 %v393_v52  ;;  %v405_v58 = vand.u32 2147483648, %v393_v52  ;;  %vm399_vm1 = vweird.f32 %v393_v52  ;;  %v403_v59 = vand.u32 2147483647, %v393_v52 }
 0x577   :  { %v406_v61 = vor.u32 1.1754944e-38, %v405_v58  ;;  %vm404_vm3 = vcmp.eq.f32.partialorder %v403_v59, 8.507059e+37 }
 0x57b   :  { %v1130_v53 = vpop.eup %1129 }
 0x57c   :  { %v395_v54 = vmul.f32 %v1130_v53, %v393_v52  ;;  %vm400_vm15 = vweird.f32 %v1130_v53 }
 0x57d   :  { %vm401_vm2 = vmor %vm399_vm1, %vm400_vm15 }
 0x57e   :  { %v396_v55 = vsub.f32 1.0, %v395_v54 }
 0x580   :  { %v397_v56 = vmul.f32 %v1130_v53, %v396_v55 }
 0x582   :  { %v398_v57 = vadd.f32 %v1130_v53, %v397_v56 }
 0x584   :  { %v402_v60 = vsel %vm401_vm2, %v1130_v53, %v398_v57 }
 0x585   :  { %v407_v63 = vsel %vm404_vm3, %v406_v61, %v402_v60 }
 0x586   :  { %v421_v6 = vsub.f32 1.0, %v407_v63  ;;  %v427_v8 = vmul.f32 %v407_v63, %v360_v45 }
 0x5dc   :  { %v412_v62 = vpop.permute.xlu0 %411 }
 0x5dd   :  { %v414_v1 = vmul.f32 %v412_v62, %v407_v63 }
 0x5df   :  { %416 = vrot.lane.b32.xlu1 %v414_v1, %s1199_s30 }
 0x651   :  { %v417_v2 = vpop.permute.xlu1 %416 }
 0x652   :  { %v419_v3 = vadd.f32 %v1381_v20, %v417_v2 }
 0x654   :  { %1131 = vtanh.f32 %v419_v3 }
 0x65a   :  { %v1132_v5 = vpop.eup %1131 }
 0x65b   :  { %423 = vrot.lane.b32.xlu2 %v1132_v5, %s1201_s10 }
 0x6b5   :  { %v424_v7 = vpop.permute.xlu2 %423 }
 0x6b6   :  { %v426_v9 = vmul.f32 %v424_v7, %v421_v6 }
 0x6b8   :  { %v428_v10 = vadd.f32 %v427_v8, %v426_v9 }
 0x6ba   :  { %430 = vrot.lane.b32.xlu0 %v428_v10, %s1201_s10 }
 0x72c   :  { %v431_v11 = vpop.permute.xlu0 %430 }
 0x72d   :  { %433 = vst.msk [vmem:[#allocation2 + $0x2] sm:$0x3] %vm365_vm14, %v431_v11  ;;  %1075 = vmatmul.msk.f32.vlgmr.msra.gmra.mxu1 %vm30_vm0, %v431_v11 }
 0x7aa   :  { %v453_v12 = vpop.f32.mrf.mxu1 }
 0x7ab   :  { %v476_v13 = vadd.f32 %v453_v12, %v1374_v17  ;;  %v456_v14 = vadd.f32 %v1381_v20, %v453_v12 }
 0x7ad   :  { %478 = vrot.lane.b32.xlu1 %v476_v13, %s1197_s22  ;;  %v1076_v15 = vmul.f32 -1.442695, %v456_v14 }
 0x7af   :  { %1133 = vpow2.f32 %v1076_v15 }
 0x7b5   :  { %v1134_v16 = vpop.eup %1133 }
 0x7b6   :  { %v460_v18 = vadd.f32 1.0, %v1134_v16 }
 0x7b8   :  { %1135 = vrcp.f32 %v460_v18  ;;  %v472_v25 = vand.u32 2147483648, %v460_v18  ;;  %vm466_vm6 = vweird.f32 %v460_v18  ;;  %v470_v26 = vand.u32 2147483647, %v460_v18 }
 0x7ba   :  { %v473_v28 = vor.u32 1.1754944e-38, %v472_v25  ;;  %vm471_vm8 = vcmp.eq.f32.partialorder %v470_v26, 8.507059e+37 }
 0x7be   :  { %v1136_v19 = vpop.eup %1135 }
 0x7bf   :  { %v462_v21 = vmul.f32 %v1136_v19, %v460_v18  ;;  %vm467_vm5 = vweird.f32 %v1136_v19 }
 0x7c0   :  { %vm468_vm7 = vmor %vm466_vm6, %vm467_vm5 }
 0x7c1   :  { %v463_v22 = vsub.f32 1.0, %v462_v21 }
 0x7c3   :  { %v464_v23 = vmul.f32 %v1136_v19, %v463_v22 }
 0x7c5   :  { %v465_v24 = vadd.f32 %v1136_v19, %v464_v23 }
 0x7c7   :  { %v469_v27 = vsel %vm468_vm7, %v1136_v19, %v465_v24 }
 0x7c8   :  { %v474_v30 = vsel %vm471_vm8, %v473_v28, %v469_v27 }
 0x7c9   :  { %v488_v35 = vsub.f32 1.0, %v474_v30  ;;  %v494_v37 = vmul.f32 %v474_v30, %v428_v10 }
 0x81f   :  { %v479_v29 = vpop.permute.xlu1 %478 }
 0x820   :  { %v481_v31 = vmul.f32 %v479_v29, %v474_v30 }
 0x822   :  { %483 = vrot.lane.b32.xlu2 %v481_v31, %s1199_s30 }
 0x87c   :  { %v484_v32 = vpop.permute.xlu2 %483 }
 0x87d   :  { %v486_v33 = vadd.f32 %v1381_v20, %v484_v32 }
 0x87f   :  { %1137 = vtanh.f32 %v486_v33 }
 0x885   :  { %v1138_v34 = vpop.eup %1137 }
 0x886   :  { %490 = vrot.lane.b32.xlu0 %v1138_v34, %s1201_s10 }
 0x8f8   :  { %v491_v36 = vpop.permute.xlu0 %490 }
 0x8f9   :  { %v493_v38 = vmul.f32 %v491_v36, %v488_v35 }
 0x8fb   :  { %v495_v39 = vadd.f32 %v494_v37, %v493_v38 }
 0x8fd   :  { %497 = vrot.lane.b32.xlu1 %v495_v39, %s1201_s10 }
 0x96f   :  { %v498_v40 = vpop.permute.xlu1 %497 }
 0x970   :  { %500 = vst.msk [vmem:[#allocation2 + $0x4] sm:$0x3] %vm365_vm14, %v498_v40  ;;  %1077 = vmatmul.msk.f32.vlgmr.msrb.gmra.mxu2 %vm30_vm0, %v498_v40 }
 0x9f3   :  { %v520_v41 = vpop.f32.mrf.mxu2 }
 0x9f4   :  { %v543_v42 = vadd.f32 %v520_v41, %v1374_v17  ;;  %v523_v43 = vadd.f32 %v1381_v20, %v520_v41 }
 0x9f6   :  { %545 = vrot.lane.b32.xlu2 %v543_v42, %s1197_s22  ;;  %v1078_v44 = vmul.f32 -1.442695, %v523_v43 }
 0x9f8   :  { %1139 = vpow2.f32 %v1078_v44 }
 0x9fe   :  { %v1140_v45 = vpop.eup %1139 }
 0x9ff   :  { %v527_v46 = vadd.f32 1.0, %v1140_v45 }
 0xa01   :  { %1141 = vrcp.f32 %v527_v46  ;;  %v539_v52 = vand.u32 2147483648, %v527_v46  ;;  %vm533_vm10 = vweird.f32 %v527_v46  ;;  %v537_v53 = vand.u32 2147483647, %v527_v46 }
 0xa03   :  { %v540_v55 = vor.u32 1.1754944e-38, %v539_v52  ;;  %vm538_vm12 = vcmp.eq.f32.partialorder %v537_v53, 8.507059e+37 }
 0xa07   :  { %v1142_v47 = vpop.eup %1141 }
 0xa08   :  { %v529_v48 = vmul.f32 %v1142_v47, %v527_v46  ;;  %vm534_vm9 = vweird.f32 %v1142_v47 }
 0xa09   :  { %vm535_vm11 = vmor %vm533_vm10, %vm534_vm9 }
 0xa0a   :  { %v530_v49 = vsub.f32 1.0, %v529_v48 }
 0xa0c   :  { %v531_v50 = vmul.f32 %v1142_v47, %v530_v49 }
 0xa0e   :  { %v532_v51 = vadd.f32 %v1142_v47, %v531_v50 }
 0xa10   :  { %v536_v54 = vsel %vm535_vm11, %v1142_v47, %v532_v51 }
 0xa11   :  { %v541_v57 = vsel %vm538_vm12, %v540_v55, %v536_v54 }
 0xa12   :  { %v555_v62 = vsub.f32 1.0, %v541_v57  ;;  %v561_v1 = vmul.f32 %v541_v57, %v495_v39 }
 0xa50   :  { %v546_v56 = vpop.permute.xlu2 %545 }
 0xa51   :  { %v548_v58 = vmul.f32 %v546_v56, %v541_v57 }
 0xa53   :  { %550 = vrot.lane.b32.xlu0 %v548_v58, %s1199_s30 }
 0xac5   :  { %v551_v59 = vpop.permute.xlu0 %550 }
 0xac6   :  { %v553_v60 = vadd.f32 %v1381_v20, %v551_v59 }
 0xac8   :  { %1143 = vtanh.f32 %v553_v60 }
 0xace   :  { %v1144_v61 = vpop.eup %1143 }
 0xacf   :  { %557 = vrot.lane.b32.xlu1 %v1144_v61, %s1201_s10  ;;  %v974_v61 = vld [vmem:[%s1516_s1 + $0x38] sm:$0xff] }
 0xad0   :  { %999 = vmatpush.msra.mxu1 %v974_v61 }
 0xb41   :  { %v558_v63 = vpop.permute.xlu1 %557 }
 0xb42   :  { %v560_v2 = vmul.f32 %v558_v63, %v555_v62  ;;  %v973_v62 = vld [vmem:[%s1516_s1 + $0x30] sm:$0xff] }
 0xb43   :  { %1000 = vmatpush.msra.mxu1 %v973_v62 }
 0xb44   :  { %v562_v3 = vadd.f32 %v561_v1, %v560_v2 }
 0xb46   :  { %564 = vrot.lane.b32.xlu2 %v562_v3, %s1201_s10 }
 0xba0   :  { %v565_v5 = vpop.permute.xlu2 %564 }
 0xba1   :  { %567 = vst.msk [vmem:[#allocation2 + $0x6] sm:$0x3] %vm365_vm14, %v565_v5  ;;  %1079 = vmatmul.msk.f32.vlgmr.msrb.gmra.mxu3 %vm30_vm0, %v565_v5 }
 0xba8   :  { %v970_v1 = vld [vmem:[#allocation2] sm:$0xff] }
 0xc24   :  { %v587_v6 = vpop.f32.mrf.mxu3 }
 0xc25   :  { %v610_v7 = vadd.f32 %v587_v6, %v1374_v17  ;;  %v590_v8 = vadd.f32 %v1381_v20, %v587_v6 }
 0xc27   :  { %612 = vrot.lane.b32.xlu0 %v610_v7, %s1197_s22  ;;  %v1080_v9 = vmul.f32 -1.442695, %v590_v8 }
 0xc29   :  { %1145 = vpow2.f32 %v1080_v9 }
 0xc2f   :  { %v1146_v10 = vpop.eup %1145 }
 0xc30   :  { %v594_v11 = vadd.f32 1.0, %v1146_v10 }
 0xc32   :  { %1147 = vrcp.f32 %v594_v11  ;;  %v606_v18 = vand.u32 2147483648, %v594_v11  ;;  %vm600_vm15 = vweird.f32 %v594_v11  ;;  %v604_v19 = vand.u32 2147483647, %v594_v11 }
 0xc34   :  { %v607_v22 = vor.u32 1.1754944e-38, %v606_v18  ;;  %vm605_vm2 = vcmp.eq.f32.partialorder %v604_v19, 8.507059e+37 }
 0xc38   :  { %v1148_v12 = vpop.eup %1147 }
 0xc39   :  { %v596_v13 = vmul.f32 %v1148_v12, %v594_v11  ;;  %vm601_vm13 = vweird.f32 %v1148_v12 }
 0xc3a   :  { %vm602_vm1 = vmor %vm600_vm15, %vm601_vm13 }
 0xc3b   :  { %v597_v14 = vsub.f32 1.0, %v596_v13 }
 0xc3d   :  { %v598_v15 = vmul.f32 %v1148_v12, %v597_v14 }
 0xc3f   :  { %v599_v16 = vadd.f32 %v1148_v12, %v598_v15 }
 0xc41   :  { %v603_v21 = vsel %vm602_vm1, %v1148_v12, %v599_v16 }
 0xc42   :  { %v608_v24 = vsel %vm605_vm2, %v607_v22, %v603_v21 }
 0xc43   :  { %v622_v29 = vsub.f32 1.0, %v608_v24  ;;  %v628_v31 = vmul.f32 %v608_v24, %v562_v3 }
 0xc99   :  { %v613_v23 = vpop.permute.xlu0 %612 }
 0xc9a   :  { %v615_v25 = vmul.f32 %v613_v23, %v608_v24 }
 0xc9c   :  { %617 = vrot.lane.b32.xlu1 %v615_v25, %s1199_s30 }
 0xd0e   :  { %v618_v26 = vpop.permute.xlu1 %617 }
 0xd0f   :  { %v620_v27 = vadd.f32 %v1381_v20, %v618_v26 }
 0xd11   :  { %1149 = vtanh.f32 %v620_v27 }
 0xd17   :  { %v1150_v28 = vpop.eup %1149 }
 0xd18   :  { %624 = vrot.lane.b32.xlu2 %v1150_v28, %s1201_s10 }
 0xd72   :  { %v625_v30 = vpop.permute.xlu2 %624 }
 0xd73   :  { %v627_v32 = vmul.f32 %v625_v30, %v622_v29 }
 0xd75   :  { %v629_v33 = vadd.f32 %v628_v31, %v627_v32 }
 0xd77   :  { %631 = vrot.lane.b32.xlu0 %v629_v33, %s1201_s10 }
 0xde9   :  { %v632_v34 = vpop.permute.xlu0 %631 }
 0xdea   :  { %634 = vst.msk [vmem:[#allocation2 + $0x8] sm:$0x3] %vm365_vm14, %v632_v34  ;;  %1081 = vmatmul.msk.f32.vlgmr.msrb.gmra.mxu0 %vm30_vm0, %v632_v34 }
 0xe67   :  { %v654_v35 = vpop.f32.mrf.mxu0 }
 0xe68   :  { %v677_v36 = vadd.f32 %v654_v35, %v1374_v17  ;;  %v657_v37 = vadd.f32 %v1381_v20, %v654_v35 }
 0xe6a   :  { %679 = vrot.lane.b32.xlu1 %v677_v36, %s1197_s22  ;;  %v1082_v38 = vmul.f32 -1.442695, %v657_v37 }
 0xe6c   :  { %1151 = vpow2.f32 %v1082_v38 }
 0xe72   :  { %v1152_v39 = vpop.eup %1151 }
 0xe73   :  { %v661_v40 = vadd.f32 1.0, %v1152_v39 }
 0xe75   :  { %1153 = vrcp.f32 %v661_v40  ;;  %v673_v46 = vand.u32 2147483648, %v661_v40  ;;  %vm667_vm5 = vweird.f32 %v661_v40  ;;  %v671_v47 = vand.u32 2147483647, %v661_v40 }
 0xe77   :  { %v674_v49 = vor.u32 1.1754944e-38, %v673_v46  ;;  %vm672_vm7 = vcmp.eq.f32.partialorder %v671_v47, 8.507059e+37 }
 0xe7b   :  { %v1154_v41 = vpop.eup %1153 }
 0xe7c   :  { %v663_v42 = vmul.f32 %v1154_v41, %v661_v40  ;;  %vm668_vm3 = vweird.f32 %v1154_v41 }
 0xe7d   :  { %vm669_vm6 = vmor %vm667_vm5, %vm668_vm3 }
 0xe7e   :  { %v664_v43 = vsub.f32 1.0, %v663_v42 }
 0xe80   :  { %v665_v44 = vmul.f32 %v1154_v41, %v664_v43 }
 0xe82   :  { %v666_v45 = vadd.f32 %v1154_v41, %v665_v44 }
 0xe84   :  { %v670_v48 = vsel %vm669_vm6, %v1154_v41, %v666_v45 }
 0xe85   :  { %v675_v51 = vsel %vm672_vm7, %v674_v49, %v670_v48 }
 0xe86   :  { %v689_v56 = vsub.f32 1.0, %v675_v51  ;;  %v695_v58 = vmul.f32 %v675_v51, %v629_v33 }
 0xedc   :  { %v680_v50 = vpop.permute.xlu1 %679 }
 0xedd   :  { %v682_v52 = vmul.f32 %v680_v50, %v675_v51 }
 0xedf   :  { %684 = vrot.lane.b32.xlu2 %v682_v52, %s1199_s30 }
 0xf39   :  { %v685_v53 = vpop.permute.xlu2 %684 }
 0xf3a   :  { %v687_v54 = vadd.f32 %v1381_v20, %v685_v53 }
 0xf3c   :  { %1155 = vtanh.f32 %v687_v54 }
 0xf42   :  { %v1156_v55 = vpop.eup %1155 }
 0xf43   :  { %691 = vrot.lane.b32.xlu0 %v1156_v55, %s1201_s10 }
 0xfb5   :  { %v692_v57 = vpop.permute.xlu0 %691 }
 0xfb6   :  { %v694_v59 = vmul.f32 %v692_v57, %v689_v56 }
 0xfb8   :  { %v696_v60 = vadd.f32 %v695_v58, %v694_v59 }
 0xfba   :  { %698 = vrot.lane.b32.xlu1 %v696_v60, %s1201_s10 }
0x102c   :  { %v699_v63 = vpop.permute.xlu1 %698 }
0x102d   :  { %701 = vst.msk [vmem:[#allocation2 + $0xa] sm:$0x3] %vm365_vm14, %v699_v63  ;;  %1083 = vmatmul.msk.f32.vlgmr.msrb.gmra.mxu1 %vm30_vm0, %v699_v63 }
0x1035   :  { %1091 = vmatmul.msk.f32.vlgmr.msra.gmra.mxu1 %vm30_vm0, %v970_v1 }
0x10aa   :  { %v721_v2 = vpop.f32.mrf.mxu1 }
0x10ab   :  { %v744_v3 = vadd.f32 %v721_v2, %v1374_v17  ;;  %v724_v5 = vadd.f32 %v1381_v20, %v721_v2 }
0x10ad   :  { %746 = vrot.lane.b32.xlu2 %v744_v3, %s1197_s22  ;;  %v1084_v6 = vmul.f32 -1.442695, %v724_v5 }
0x10af   :  { %1157 = vpow2.f32 %v1084_v6 }
0x10b5   :  { %v1158_v7 = vpop.eup %1157 }
0x10b6   :  { %v728_v8 = vadd.f32 1.0, %v1158_v7 }
0x10b8   :  { %1159 = vrcp.f32 %v728_v8  ;;  %v740_v14 = vand.u32 2147483648, %v728_v8  ;;  %vm734_vm9 = vweird.f32 %v728_v8  ;;  %v738_v15 = vand.u32 2147483647, %v728_v8 }
0x10ba   :  { %v741_v18 = vor.u32 1.1754944e-38, %v740_v14  ;;  %vm739_vm11 = vcmp.eq.f32.partialorder %v738_v15, 8.507059e+37 }
0x10be   :  { %v1160_v9 = vpop.eup %1159 }
0x10bf   :  { %v730_v10 = vmul.f32 %v1160_v9, %v728_v8  ;;  %vm735_vm8 = vweird.f32 %v1160_v9 }
0x10c0   :  { %vm736_vm10 = vmor %vm734_vm9, %vm735_vm8 }
0x10c1   :  { %v731_v11 = vsub.f32 1.0, %v730_v10 }
0x10c3   :  { %v732_v12 = vmul.f32 %v1160_v9, %v731_v11 }
0x10c5   :  { %v733_v13 = vadd.f32 %v1160_v9, %v732_v12 }
0x10c7   :  { %v737_v16 = vsel %vm736_vm10, %v1160_v9, %v733_v13 }
0x10c8   :  { %v742_v21 = vsel %vm739_vm11, %v741_v18, %v737_v16  ;;  %vm206_vm11 = vcmask 254976  }
0x10c9   :  { %v756_v26 = vsub.f32 1.0, %v742_v21  ;;  %v762_v28 = vmul.f32 %v742_v21, %v696_v60 }
0x1107   :  { %v747_v19 = vpop.permute.xlu2 %746 }
0x1108   :  { %v749_v22 = vmul.f32 %v747_v19, %v742_v21 }
0x110a   :  { %751 = vrot.lane.b32.xlu0 %v749_v22, %s1199_s30 }
0x117c   :  { %v752_v23 = vpop.permute.xlu0 %751 }
0x117d   :  { %v754_v24 = vadd.f32 %v1381_v20, %v752_v23 }
0x117f   :  { %1161 = vtanh.f32 %v754_v24 }
0x1185   :  { %v1162_v25 = vpop.eup %1161 }
0x1186   :  { %758 = vrot.lane.b32.xlu1 %v1162_v25, %s1201_s10 }
0x11f8   :  { %v759_v27 = vpop.permute.xlu1 %758 }
0x11f9   :  { %v761_v29 = vmul.f32 %v759_v27, %v756_v26 }
0x11fb   :  { %v763_v30 = vadd.f32 %v762_v28, %v761_v29 }
0x11fd   :  { %765 = vrot.lane.b32.xlu2 %v763_v30, %s1201_s10 }
0x1257   :  { %v766_v31 = vpop.permute.xlu2 %765 }
0x1258   :  { %768 = vst.msk [vmem:[#allocation2 + $0xc] sm:$0x3] %vm365_vm14, %v766_v31  ;;  %1085 = vmatmul.msk.f32.vlgmr.msra.gmra.mxu2 %vm30_vm0, %v766_v31 }
0x12db   :  { %v788_v32 = vpop.f32.mrf.mxu2 }
0x12dc   :  { %v811_v33 = vadd.f32 %v788_v32, %v1374_v17  ;;  %v791_v34 = vadd.f32 %v1381_v20, %v788_v32 }
0x12de   :  { %813 = vrot.lane.b32.xlu0 %v811_v33, %s1197_s22  ;;  %v1086_v35 = vmul.f32 -1.442695, %v791_v34 }
0x12e0   :  { %1163 = vpow2.f32 %v1086_v35 }
0x12e6   :  { %v1164_v36 = vpop.eup %1163 }
0x12e7   :  { %v795_v37 = vadd.f32 1.0, %v1164_v36 }
0x12e9   :  { %1165 = vrcp.f32 %v795_v37  ;;  %v807_v43 = vand.u32 2147483648, %v795_v37  ;;  %vm801_vm13 = vweird.f32 %v795_v37  ;;  %v805_v44 = vand.u32 2147483647, %v795_v37 }
0x12eb   :  { %v808_v46 = vor.u32 1.1754944e-38, %v807_v43  ;;  %vm806_vm1 = vcmp.eq.f32.partialorder %v805_v44, 8.507059e+37  ;;  %v207_v44 = vsel %vm206_vm11, %v1325_v0, -inf }
0x12ef   :  { %v1166_v38 = vpop.eup %1165 }
0x12f0   :  { %v797_v39 = vmul.f32 %v1166_v38, %v795_v37  ;;  %vm802_vm12 = vweird.f32 %v1166_v38 }
0x12f1   :  { %vm803_vm15 = vmor %vm801_vm13, %vm802_vm12 }
0x12f2   :  { %v798_v40 = vsub.f32 1.0, %v797_v39 }
0x12f4   :  { %v799_v41 = vmul.f32 %v1166_v38, %v798_v40 }
0x12f6   :  { %v800_v42 = vadd.f32 %v1166_v38, %v799_v41 }
0x12f8   :  { %v804_v45 = vsel %vm803_vm15, %v1166_v38, %v800_v42 }
0x12f9   :  { %v809_v48 = vsel %vm806_vm1, %v808_v46, %v804_v45 }
0x12fa   :  { %v823_v53 = vsub.f32 1.0, %v809_v48  ;;  %v829_v55 = vmul.f32 %v809_v48, %v763_v30 }
0x1350   :  { %v814_v47 = vpop.permute.xlu0 %813 }
0x1351   :  { %v816_v49 = vmul.f32 %v814_v47, %v809_v48  ;;  %v1110_v48 = vld [vmem:[%s1518_s2 + $0x9] ss:$0 sm:$0xff] }
0x1353   :  { %818 = vrot.lane.b32.xlu1 %v816_v49, %s1199_s30 }
0x13c5   :  { %v819_v50 = vpop.permute.xlu1 %818 }
0x13c6   :  { %v821_v51 = vadd.f32 %v1381_v20, %v819_v50  ;;  %v1002_v50 = vpop.f32.mrf.mxu1 }
0x13c8   :  { %1167 = vtanh.f32 %v821_v51 }
0x13ce   :  { %v1168_v52 = vpop.eup %1167 }
0x13cf   :  { %825 = vrot.lane.b32.xlu2 %v1168_v52, %s1201_s10 }
0x1429   :  { %v826_v54 = vpop.permute.xlu2 %825 }
0x142a   :  { %v828_v56 = vmul.f32 %v826_v54, %v823_v53  ;;  %v1003_v53 = vadd.f32 %v1110_v48, %v1002_v50 }
0x142c   :  { %v830_v57 = vadd.f32 %v829_v55, %v828_v56  ;;  %v1011_v54 = vsel %vm78_vm4, %v1003_v53, -inf }
0x142e   :  { %832 = vrot.lane.b32.xlu0 %v830_v57, %s1201_s10 }
0x14a0   :  { %v833_v58 = vpop.permute.xlu0 %832 }
0x14a1   :  { %835 = vst.msk [vmem:[#allocation2 + $0xe] sm:$0x3] %vm365_vm14, %v833_v58  ;;  %1087 = vmatmul.msk.f32.vlgmr.msra.gmra.mxu3 %vm30_vm0, %v833_v58 }
0x14a8   :  { %v971_v59 = vld [vmem:[#allocation2 + $0x8] sm:$0xff] }
0x14a9   :  { %1092 = vmatmul.msk.f32.gmra.mxu1 %vm30_vm0, %v971_v59 }
0x1524   :  { %v855_v60 = vpop.f32.mrf.mxu3 }
0x1525   :  { %v878_v61 = vadd.f32 %v855_v60, %v1374_v17  ;;  %v858_v62 = vadd.f32 %v1381_v20, %v855_v60 }
0x1527   :  { %880 = vrot.lane.b32.xlu1 %v878_v61, %s1197_s22  ;;  %v1088_v63 = vmul.f32 -1.442695, %v858_v62  ;;  %v1005_v61 = vpop.f32.mrf.mxu1 }
0x1528   :  { %v1006_v62 = vadd.f32 %v1110_v48, %v1005_v61 }
0x1529   :  { %1169 = vpow2.f32 %v1088_v63 }
0x152f   :  { %v1170_v1 = vpop.eup %1169 }
0x1530   :  { %v862_v2 = vadd.f32 1.0, %v1170_v1 }
0x1532   :  { %1171 = vrcp.f32 %v862_v2  ;;  %v874_v9 = vand.u32 2147483648, %v862_v2  ;;  %vm868_vm3 = vweird.f32 %v862_v2  ;;  %v872_v10 = vand.u32 2147483647, %v862_v2 }
0x1534   :  { %v875_v12 = vor.u32 1.1754944e-38, %v874_v9  ;;  %vm873_vm6 = vcmp.eq.f32.partialorder %v872_v10, 8.507059e+37 }
0x1538   :  { %v1172_v3 = vpop.eup %1171 }
0x1539   :  { %v864_v5 = vmul.f32 %v1172_v3, %v862_v2  ;;  %vm869_vm2 = vweird.f32 %v1172_v3  ;;  %v1014_v2 = vsel %vm78_vm4, %v1006_v62, -inf }
0x153a   :  { %vm870_vm5 = vmor %vm868_vm3, %vm869_vm2 }
0x153b   :  { %v865_v6 = vsub.f32 1.0, %v864_v5 }
0x153d   :  { %v866_v7 = vmul.f32 %v1172_v3, %v865_v6 }
0x153f   :  { %v867_v8 = vadd.f32 %v1172_v3, %v866_v7 }
0x1541   :  { %v871_v11 = vsel %vm870_vm5, %v1172_v3, %v867_v8 }
0x1542   :  { %v876_v14 = vsel %vm873_vm6, %v875_v12, %v871_v11 }
0x1543   :  { %v890_v21 = vsub.f32 1.0, %v876_v14  ;;  %v896_v23 = vmul.f32 %v876_v14, %v830_v57 }
0x1599   :  { %v881_v13 = vpop.permute.xlu1 %880 }
0x159a   :  { %v883_v15 = vmul.f32 %v881_v13, %v876_v14 }
0x159c   :  { %885 = vrot.lane.b32.xlu2 %v883_v15, %s1199_s30 }
0x15f6   :  { %v886_v16 = vpop.permute.xlu2 %885 }
0x15f7   :  { %v888_v18 = vadd.f32 %v1381_v20, %v886_v16 }
0x15f9   :  { %1173 = vtanh.f32 %v888_v18 }
0x15ff   :  { %v1174_v19 = vpop.eup %1173 }
0x1600   :  { %892 = vrot.lane.b32.xlu0 %v1174_v19, %s1201_s10 }
0x1672   :  { %v893_v22 = vpop.permute.xlu0 %892 }
0x1673   :  { %v895_v24 = vmul.f32 %v893_v22, %v890_v21 }
0x1675   :  { %v897_v25 = vadd.f32 %v896_v23, %v895_v24 }
0x1677   :  { %899 = vrot.lane.b32.xlu1 %v897_v25, %s1201_s10 }
0x16e9   :  { %v900_v26 = vpop.permute.xlu1 %899 }
0x16ea   :  { %902 = vst.msk [vmem:[#allocation2 + $0x10] sm:$0x3] %vm365_vm14, %v900_v26  ;;  %1089 = vmatmul.msk.f32.vlgmr.msra.gmra.mxu0 %vm30_vm0, %v900_v26 }
0x1767   :  { %v922_v27 = vpop.f32.mrf.mxu0 }
0x1768   :  { %v945_v28 = vadd.f32 %v922_v27, %v1374_v17  ;;  %v925_v29 = vadd.f32 %v1381_v20, %v922_v27 }
0x176a   :  { %947 = vrot.lane.b32.xlu2 %v945_v28, %s1197_s22  ;;  %v1090_v30 = vmul.f32 -1.442695, %v925_v29 }
0x176c   :  { %1175 = vpow2.f32 %v1090_v30 }
0x1772   :  { %v1176_v31 = vpop.eup %1175 }
0x1773   :  { %v929_v32 = vadd.f32 1.0, %v1176_v31 }
0x1775   :  { %1177 = vrcp.f32 %v929_v32  ;;  %v941_v38 = vand.u32 2147483648, %v929_v32  ;;  %vm935_vm8 = vweird.f32 %v929_v32  ;;  %v939_v39 = vand.u32 2147483647, %v929_v32 }
0x1777   :  { %v942_v40 = vor.u32 1.1754944e-38, %v941_v38  ;;  %vm940_vm10 = vcmp.eq.f32.partialorder %v939_v39, 8.507059e+37 }
0x177b   :  { %v1178_v33 = vpop.eup %1177 }
0x177c   :  { %v931_v34 = vmul.f32 %v1178_v33, %v929_v32  ;;  %vm936_vm7 = vweird.f32 %v1178_v33 }
0x177d   :  { %vm937_vm9 = vmor %vm935_vm8, %vm936_vm7 }
0x177e   :  { %v932_v35 = vsub.f32 1.0, %v931_v34 }
0x1780   :  { %v933_v36 = vmul.f32 %v1178_v33, %v932_v35 }
0x1782   :  { %v934_v37 = vadd.f32 %v1178_v33, %v933_v36 }
0x1784   :  { %v938_v17 = vsel %vm937_vm9, %v1178_v33, %v934_v37 }
0x1785   :  { %v943_v42 = vsel %vm940_vm10, %v942_v40, %v938_v17 }
0x1786   :  { %v957_v56 = vsub.f32 1.0, %v943_v42  ;;  %v963_v58 = vmul.f32 %v943_v42, %v897_v25 }
0x17c4   :  { %v948_v41 = vpop.permute.xlu2 %947 }
0x17c5   :  { %v950_v43 = vmul.f32 %v948_v41, %v943_v42 }
0x17c7   :  { %952 = vrot.lane.b32.xlu0 %v950_v43, %s1199_s30 }
0x17f1   :  { %208 = vmax.xlane.f32.xlu0 %v207_v44 }
0x1839   :  { %v953_v45 = vpop.permute.xlu0 %952 }
0x183a   :  { %v955_v46 = vadd.f32 %v1381_v20, %v953_v45 }
0x183c   :  { %1179 = vtanh.f32 %v955_v46 }
0x1842   :  { %v1180_v47 = vpop.eup %1179 }
0x1843   :  { %959 = vrot.lane.b32.xlu1 %v1180_v47, %s1201_s10 }
0x1864   :  { %v209_v49 = vpop.xlane.xlu0 %208 }
0x1865   :  { %v210_v51 = vsub.f32 %v1325_v0, %v209_v49 }
0x1867   :  { %v211_v52 = vmul.f32 1.442695, %v210_v51 }
0x1869   :  { %1181 = vpow2.f32 %v211_v52 }
0x186d   :  { %1012 = vmax.xlane.f32.xlu1 %v1011_v54 }
0x186f   :  { %v1182_v55 = vpop.eup %1181 }
0x1870   :  { %v213_v20 = vsel %vm206_vm11, %v1182_v55, 0.0 }
0x1871   :  { %214 = vadd.xlane.f32.xlu0 %v213_v20 }
0x18b5   :  { %v960_v57 = vpop.permute.xlu1 %959 }
0x18b6   :  { %v962_v59 = vmul.f32 %v960_v57, %v957_v56 }
0x18b8   :  { %v964_v60 = vadd.f32 %v963_v58, %v962_v59 }
0x18ba   :  { %966 = vrot.lane.b32.xlu2 %v964_v60, %s1201_s10 }
0x18e0   :  { %v1013_v63 = vpop.xlane.xlu1 %1012 }
0x18e1   :  { %v1021_v1 = vsub.f32 %v1003_v53, %v1013_v63 }
0x18e3   :  { %v1024_v3 = vmul.f32 1.442695, %v1021_v1  ;;  %1015 = vmax.xlane.f32.xlu2 %v1014_v2 }
0x18e4   :  { %v215_v5 = vpop.xlane.xlu0 %214 }
0x18e5   :  { %1183 = vpow2.f32 %v1024_v3 }
0x18e6   :  { %1185 = vlog2.f32 %v215_v5 }
0x18eb   :  { %v1184_v6 = vpop.eup %1183 }
0x18ec   :  { %v1186_v7 = vpop.eup %1185  ;;  %v1030_v8 = vsel %vm78_vm4, %v1184_v6, 0.0 }
0x18ed   :  { %v217_v9 = vmul.f32 0.6931472, %v1186_v7  ;;  %1031 = vadd.xlane.f32.xlu1 %v1030_v8 }
0x18ef   :  { %v218_v10 = vadd.f32 %v217_v9, %v209_v49 }
0x18f1   :  { %v219_v11 = vsub.f32 %v1325_v0, %v218_v10 }
0x18f3   :  { %280 = vst.msk [vmem:[%s1519_s3] sm:$0x3] %vm206_vm11, %v219_v11 }
0x1906   :  { %283 = vperm.xlu1 %1100, %v1335_v4  }
0x1914   :  { %v967_v12 = vpop.permute.xlu2 %966 }
0x1915   :  { %969 = vst.msk [vmem:[#allocation2 + $0x12] sm:$0x3] %vm365_vm14, %v967_v12 }
0x191c   :  { %v972_v13 = vld [vmem:[#allocation2 + $0x10] sm:$0xf] }
0x191d   :  { %1093 = vmatmul.msk.f32.gmra.mxu1 %vm30_vm0, %v972_v13  ;;  %vm1017_vm0 = vcmask 257024  }
0x1956   :  { %v1016_v4 = vpop.xlane.xlu2 %1015 }
0x1957   :  { %v1022_v21 = vsub.f32 %v1006_v62, %v1016_v4 }
0x1959   :  { %v1026_v22 = vmul.f32 1.442695, %v1022_v21 }
0x1960   :  { %v1032_v14 = vpop.xlane.xlu1 %1031 }
0x1961   :  { %1187 = vlog2.f32 %v1032_v14 }
0x1962   :  { %1189 = vpow2.f32 %v1026_v22 }
0x1967   :  { %v1188_v15 = vpop.eup %1187 }
0x1968   :  { %v1040_v16 = vmul.f32 0.6931472, %v1188_v15  ;;  %v1190_v26 = vpop.eup %1189 }
0x1969   :  { %v1033_v27 = vsel %vm78_vm4, %v1190_v26, 0.0 }
0x196a   :  { %v1045_v18 = vadd.f32 %v1040_v16, %v1013_v63 }
0x196c   :  { %v1048_v19 = vsub.f32 %v1003_v53, %v1045_v18 }
0x196e   :  { %1051 = vst.msk [vmem:[%s1520_s4] sm:$0xff] %vm78_vm4, %v1048_v19 }
0x1978   :  { %v284_v0 = vpop.permute.xlu1 %283 }
0x1979   :  { %286 = vst.msk [vmem:[%s1519_s3 + $0x2] sm:$0x3] %vm206_vm11, %v284_v0 }
0x199a   :  { %v1008_v23 = vpop.f32.mrf.mxu1 }
0x199b   :  { %v1009_v24 = vadd.f32 %v1110_v48, %v1008_v23 }
0x199d   :  { %v1018_v25 = vsel %vm1017_vm0, %v1009_v24, -inf }
0x199e   :  { %1019 = vmax.xlane.f32.xlu2 %v1018_v25 }
0x19a6   :  { %1034 = vadd.xlane.f32.xlu2 %v1033_v27 }
0x1a11   :  { %v1020_v28 = vpop.xlane.xlu2 %1019 }
0x1a12   :  { %v1023_v29 = vsub.f32 %v1009_v24, %v1020_v28 }
0x1a14   :  { %v1028_v30 = vmul.f32 1.442695, %v1023_v29 }
0x1a16   :  { %1191 = vpow2.f32 %v1028_v30 }
0x1a19   :  { %v1035_v31 = vpop.xlane.xlu2 %1034 }
0x1a1a   :  { %1193 = vlog2.f32 %v1035_v31 }
0x1a1c   :  { %v1192_v32 = vpop.eup %1191 }
0x1a1d   :  { %v1036_v33 = vsel %vm1017_vm0, %v1192_v32, 0.0 }
0x1a1e   :  { %1037 = vadd.xlane.f32.xlu0 %v1036_v33 }
0x1a20   :  { %v1194_v34 = vpop.eup %1193 }
0x1a21   :  { %v1042_v35 = vmul.f32 0.6931472, %v1194_v34 }
0x1a23   :  { %v1046_v36 = vadd.f32 %v1042_v35, %v1016_v4 }
0x1a25   :  { %v1049_v37 = vsub.f32 %v1006_v62, %v1046_v36 }
0x1a27   :  { %1052 = vst.msk [vmem:[%s1520_s4 + $0x8] sm:$0xff] %vm78_vm4, %v1049_v37 }
0x1a91   :  { %v1038_v38 = vpop.xlane.xlu0 %1037 }
0x1a92   :  { %1195 = vlog2.f32 %v1038_v38 }
0x1a98   :  { %v1196_v39 = vpop.eup %1195 }
0x1a99   :  { %v1044_v17 = vmul.f32 0.6931472, %v1196_v39 }
0x1a9b   :  { %v1047_v40 = vadd.f32 %v1044_v17, %v1020_v28 }
0x1a9d   :  { %v1050_v41 = vsub.f32 %v1009_v24, %v1047_v40 }
0x1a9f   :  { %1053 = vst.msk [vmem:[%s1520_s4 + $0x10] sm:$0xf] %vm1017_vm0, %v1050_v41 }

</bundles_post_ra>
